<compile_context>
chip_gen: v7x
topology: tpu7x:2x2x1
jax: 0.10.0
libtpu: 0.0.40
codegen_flags: <defaults>
</compile_context>

<pallas_src>
import jax
import jax.numpy as jnp
from jax.experimental import pallas as pl
from jax.experimental.pallas import tpu as pltpu

BN_EPS = 1e-4


# ---------------------------------------------------------------------------
# small helpers
# ---------------------------------------------------------------------------
def _round_up(v, m):
    return -(-v // m) * m


def _vmem_limit_bytes():
    """Per-generation scoped-VMEM request (128 MiB on v5e/v6e, 64 MiB on v7x)."""
    cap = 64 * 1024 * 1024
    try:
        cap = int(pltpu.get_tpu_info().vmem_capacity_bytes)
    except Exception:
        pass
    return min(cap * 3 // 4, 100 * 1024 * 1024)


def _step_footprint_bytes(tile_h, wcin, wcout, tiled_h):
    """Per-grid-step VMEM occupancy estimate, including (8,128) layout padding."""
    li = _round_up(wcin, 128)
    lo = _round_up(wcout, 128)
    th = _round_up(tile_h, 8)
    main = 2 * th * li * 4                         # double-buffered input tile
    halo = (2 * 2 * 8 * li * 4) if tiled_h else 0  # two 8-row halo blocks
    wts = 2 * 3 * _round_up(wcin, 8) * lo * 4      # banded weight block
    outb = 2 * th * lo * 4                         # output tile (pass B)
    scratch = _round_up(tile_h + 2, 8) * li * 4    # padded-rows staging buffer
    acc = th * lo * 4                              # f32 accumulator (vregs/spill)
    return main + halo + wts + outb + scratch + acc


def _pick_tile_h(N, H, wcin, wcout, budget):
    """Largest legal H-tile fitting the budget; keep >=2 grid steps for v7x."""
    if H % 8 != 0:
        return H                                   # single block along H
    legal = sorted({H} | {t for t in range(8, H, 8) if H % t == 0}, reverse=True)
    fitting = [t for t in legal if
               _step_footprint_bytes(t, wcin, wcout, t < H) <= budget]
    if N == 1:
        multi = [t for t in fitting if H // t >= 2]   # both TCs busy on v7x
        if multi:
            return multi[0]
    if fitting:
        return fitting[0]
    return legal[-1]


# ---------------------------------------------------------------------------
# banded (block-Toeplitz) weights: fold the 3x3 W-axis taps + zero padding
# into one (W*Cin, W*Cout) matrix per row offset dh.
# ---------------------------------------------------------------------------
def _banded_weights(w, W):
    """w: (3,3,Cin,Cout) -> (3, W*Cin, W*Cout).

    out_row[h, wo*Cout+co] = sum_dh sum_{wi,ci} in_row[h+dh-1, wi*Cin+ci]
                                               * band[dh, wi*Cin+ci, wo*Cout+co]
    with band[dh, wi*Cin+ci, wo*Cout+co] = w[dh, wi-wo+1, ci, co] when the tap
    is in range (out-of-range taps are absent => 'same' zero padding along W).
    """
    _, _, cin, cout = w.shape
    wi = jnp.arange(W)[:, None]
    wo = jnp.arange(W)[None, :]
    dw = wi - wo + 1                                       # (W, W)
    valid = (dw >= 0) & (dw <= 2)
    big = w[:, jnp.clip(dw, 0, 2)]                         # (3, W, W, Cin, Cout)
    big = big * valid[None, :, :, None, None].astype(w.dtype)
    big = jnp.transpose(big, (0, 1, 3, 2, 4))              # (3, W, Cin, W, Cout)
    return big.reshape(3, W * cin, W * cout)


# ---------------------------------------------------------------------------
# kernels (built per layer so tile_h / n_h are compile-time constants)
# ---------------------------------------------------------------------------
def _build_kernels(tile_h, n_h):
    def accumulate(xm_ref, ha_ref, hb_ref, wt_ref, xs_ref):
        """Assemble (tile_h+2, W*Cin) padded rows in scratch, 3 fat MXU dots."""
        wcin = xs_ref.shape[1]
        xs_ref[1:tile_h + 1, :] = xm_ref[0]
        if n_h == 1:
            zero = jnp.zeros((1, wcin), jnp.float32)
            xs_ref[0:1, :] = zero
            xs_ref[tile_h + 1:tile_h + 2, :] = zero
        else:
            h = pl.program_id(1)
            top_keep = jnp.where(h == 0, 0.0, 1.0)          # zero pad at image top
            bot_keep = jnp.where(h == n_h - 1, 0.0, 1.0)    # zero pad at image bottom
            xs_ref[0:1, :] = ha_ref[0, 7:8, :] * top_keep
            xs_ref[tile_h + 1:tile_h + 2, :] = hb_ref[0, 0:1, :] * bot_keep
        acc = jnp.dot(xs_ref[0:tile_h, :], wt_ref[0],
                      preferred_element_type=jnp.float32)
        acc = acc + jnp.dot(xs_ref[1:tile_h + 1, :], wt_ref[1],
                            preferred_element_type=jnp.float32)
        acc = acc + jnp.dot(xs_ref[2:tile_h + 2, :], wt_ref[2],
                            preferred_element_type=jnp.float32)
        return acc                                          # (tile_h, W*Cout) f32

    if n_h == 1:
        def stats_kernel(xm_ref, wt_ref, sum_ref, sq_ref, xs_ref):
            acc = accumulate(xm_ref, None, None, wt_ref, xs_ref)
            sum_ref[...] = jnp.sum(acc, axis=0, keepdims=True).reshape(sum_ref.shape)
            sq_ref[...] = jnp.sum(acc * acc, axis=0, keepdims=True).reshape(sq_ref.shape)

        def out_kernel(xm_ref, wt_ref, sc_ref, sh_ref, o_ref, xs_ref):
            acc = accumulate(xm_ref, None, None, wt_ref, xs_ref)
            y = jnp.maximum(acc * sc_ref[...] + sh_ref[...], 0.0)
            o_ref[...] = y.reshape(o_ref.shape)
    else:
        def stats_kernel(xm_ref, ha_ref, hb_ref, wt_ref, sum_ref, sq_ref, xs_ref):
            acc = accumulate(xm_ref, ha_ref, hb_ref, wt_ref, xs_ref)
            sum_ref[...] = jnp.sum(acc, axis=0, keepdims=True).reshape(sum_ref.shape)
            sq_ref[...] = jnp.sum(acc * acc, axis=0, keepdims=True).reshape(sq_ref.shape)

        def out_kernel(xm_ref, ha_ref, hb_ref, wt_ref, sc_ref, sh_ref, o_ref, xs_ref):
            acc = accumulate(xm_ref, ha_ref, hb_ref, wt_ref, xs_ref)
            y = jnp.maximum(acc * sc_ref[...] + sh_ref[...], 0.0)
            o_ref[...] = y.reshape(o_ref.shape)

    return stats_kernel, out_kernel


# ---------------------------------------------------------------------------
# one ConvBnRelu2d layer on lane-dense activations
# ---------------------------------------------------------------------------
def conv_bn_relu_dense(x_dense, w, gamma, beta, W):
    """x_dense: (N, H, W*Cin) f32 (channel-fastest lane packing);
    w: (3,3,Cin,Cout) f32; gamma/beta: (Cout,). Returns (N, H, W*Cout) f32."""
    N, H, wcin = x_dense.shape
    cin, cout = w.shape[2], w.shape[3]
    assert wcin == W * cin
    wcout = W * cout

    wt = _banded_weights(w, W)                            # (3, W*Cin, W*Cout)

    vmem_limit = _vmem_limit_bytes()
    tile_h = _pick_tile_h(N, H, wcin, wcout, budget=vmem_limit // 2)
    n_h = H // tile_h
    grid = (N, n_h)

    stats_kernel, out_kernel = _build_kernels(tile_h, n_h)

    main_spec = pl.BlockSpec((1, tile_h, wcin), lambda n, h: (n, h, 0))
    wt_spec = pl.BlockSpec((3, wcin, wcout), lambda n, h: (0, 0, 0))
    in_specs = [main_spec]
    args = [x_dense]
    if n_h > 1:
        # 8-row blocks containing the single halo row above / below this tile;
        # the exact row is picked in-kernel, clamped + zero-masked at the border.
        halo_above = pl.BlockSpec(
            (1, 8, wcin),
            lambda n, h: (n, jnp.maximum(h * tile_h - 1, 0) // 8, 0))
        halo_below = pl.BlockSpec(
            (1, 8, wcin),
            lambda n, h: (n, jnp.minimum((h + 1) * tile_h, H - 1) // 8, 0))
        in_specs += [halo_above, halo_below]
        args += [x_dense, x_dense]
    in_specs.append(wt_spec)
    args.append(wt)

    scratch = [pltpu.VMEM((tile_h + 2, wcin), jnp.float32)]
    cparams = pltpu.CompilerParams(
        dimension_semantics=("parallel", "parallel"),
        vmem_limit_bytes=vmem_limit)

    mxu_flops = 2 * N * H * 3 * wcin * wcout
    in_bytes = x_dense.size * 4 + wt.size * 4

    # ---- Pass A: conv -> per-tile partial BN statistics (lane-dense) -------
    sums, sqs = pl.pallas_call(
        stats_kernel,
        out_shape=(jax.ShapeDtypeStruct((N, n_h, 1, wcout), jnp.float32),
                   jax.ShapeDtypeStruct((N, n_h, 1, wcout), jnp.float32)),
        grid=grid,
        in_specs=in_specs,
        out_specs=(pl.BlockSpec((1, 1, 1, wcout), lambda n, h: (n, h, 0, 0)),
                   pl.BlockSpec((1, 1, 1, wcout), lambda n, h: (n, h, 0, 0))),
        scratch_shapes=scratch,
        compiler_params=cparams,
        cost_estimate=pl.CostEstimate(
            flops=mxu_flops, transcendentals=0,
            bytes_accessed=in_bytes + 2 * N * n_h * wcout * 4),
    )(*args)

    # ---- finalize train-mode BN (biased variance) — tiny, plain JAX --------
    cnt = float(N * H * W)
    ch_sum = jnp.sum(sums, axis=(0, 1, 2)).reshape(W, cout).sum(axis=0)
    ch_sq = jnp.sum(sqs, axis=(0, 1, 2)).reshape(W, cout).sum(axis=0)
    mean = ch_sum / cnt
    # TODO(synk): one-pass E[x^2]-mean^2 can cancel for large activations;
    # switch to shifted/two-pass stat accumulation if tighter stats are needed.
    var = jnp.maximum(ch_sq / cnt - mean * mean, 0.0)
    scale = gamma * jax.lax.rsqrt(var + BN_EPS)
    shift = beta - mean * scale
    scale_d = jnp.tile(scale, W).reshape(1, wcout)        # lane-dense per-channel
    shift_d = jnp.tile(shift, W).reshape(1, wcout)

    # ---- Pass B: conv recomputed + fused scale/shift/ReLU, lane-dense out --
    out = pl.pallas_call(
        out_kernel,
        out_shape=jax.ShapeDtypeStruct((N, H, wcout), jnp.float32),
        grid=grid,
        in_specs=in_specs + [pl.BlockSpec((1, wcout), lambda n, h: (0, 0)),
                             pl.BlockSpec((1, wcout), lambda n, h: (0, 0))],
        out_specs=pl.BlockSpec((1, tile_h, wcout), lambda n, h: (n, h, 0)),
        scratch_shapes=scratch,
        compiler_params=cparams,
        cost_estimate=pl.CostEstimate(
            flops=mxu_flops + 3 * N * H * wcout, transcendentals=0,
            bytes_accessed=in_bytes + N * H * wcout * 4),
    )(*(args + [scale_d, shift_d]))

    return out


# ---------------------------------------------------------------------------
# Bilinear 2x upsample, align_corners=False (matches F.upsample defaults).
# Pure layout/interp glue, kept in plain JAX.
# ---------------------------------------------------------------------------
def upsample2x_bilinear(x_nhwc):
    def up1d(a, axis):
        L = a.shape[axis]
        idx = jnp.arange(L)
        left = jnp.take(a, jnp.maximum(idx - 1, 0), axis=axis)
        right = jnp.take(a, jnp.minimum(idx + 1, L - 1), axis=axis)
        even = 0.75 * a + 0.25 * left      # out[2j]   : src coord j - 0.25
        odd = 0.75 * a + 0.25 * right      # out[2j+1] : src coord j + 0.25
        stacked = jnp.stack([even, odd], axis=axis + 1)
        new_shape = list(a.shape)
        new_shape[axis] = 2 * L
        return stacked.reshape(new_shape)

    return up1d(up1d(x_nhwc, 1), 2)


# ---------------------------------------------------------------------------
# StackDecoder forward (NCHW public API, lane-dense (N,H,W*C) internally)
# ---------------------------------------------------------------------------
def stack_decoder_forward(x_big_nchw, x_nchw, params):
    x_big = jnp.transpose(x_big_nchw, (0, 2, 3, 1))  # -> NHWC
    x = jnp.transpose(x_nchw, (0, 2, 3, 1))          # -> NHWC

    # TODO(synk): fuse upsample+concat into the first conv kernel (build the
    # interpolated rows in VMEM) to drop this HBM intermediate.
    y = upsample2x_bilinear(x)
    y = jnp.concatenate([y, x_big], axis=-1)         # cat([up(x), x_big], C)

    N, H, W, c0 = y.shape
    y = y.reshape(N, H, W * c0)                      # lane-dense layout
    for (w, g, b) in params:                         # 3x ConvBnRelu2d (Pallas)
        y = conv_bn_relu_dense(y, w, g, b, W)

    cy = params[-1][0].shape[-1]
    y = y.reshape(N, H, W, cy)
    return jnp.transpose(y, (0, 3, 1, 2))            # back to NCHW


def init_params(key, x_big_channels, x_channels, y_channels):
    """Deterministic synthetic parameters for the 3 ConvBnRelu2d layers."""
    cins = [x_big_channels + x_channels, y_channels, y_channels]
    params = []
    for layer, cin in enumerate(cins):
        kw, kg, kb = jax.random.split(jax.random.fold_in(key, layer), 3)
        w = 0.1 * jax.random.normal(kw, (3, 3, cin, y_channels), jnp.float32)
        gamma = 1.0 + 0.1 * jax.random.normal(kg, (y_channels,), jnp.float32)
        beta = 0.1 * jax.random.normal(kb, (y_channels,), jnp.float32)
        params.append((w, gamma, beta))
    return params


if __name__ == "__main__":
    key = jax.random.PRNGKey(0)
    k_big, k_x, k_p = jax.random.split(key, 3)

    # StackDecoder(x_big_channels=4, x_channels=2, y_channels=8)
    N, Cbig, Cx, Cy = 2, 4, 2, 8
    H, W = 16, 16

    x_big = jax.random.normal(k_big, (N, Cbig, H, W), jnp.float32)       # NCHW
    x = jax.random.normal(k_x, (N, Cx, H // 2, W // 2), jnp.float32)     # NCHW

    params = init_params(k_p, Cbig, Cx, Cy)

    fwd = jax.jit(stack_decoder_forward)
    y = fwd(x_big, x, params)
    jax.block_until_ready(y)

    assert y.shape == (N, Cy, H, W), y.shape
    assert y.dtype == jnp.float32
    print("KERNEL_OK")
</pallas_src>

<mosaic_0001>
module attributes {stable_mosaic.version = 11 : i64} {
  func.func @stats_kernel(%arg0: i32, %arg1: i32, %arg2: memref<1x16x96xf32, #tpu.memory_space<vmem>>, %arg3: memref<3x96x128xf32, #tpu.memory_space<vmem>>, %arg4: memref<1x1x1x128xf32, #tpu.memory_space<vmem>>, %arg5: memref<1x1x1x128xf32, #tpu.memory_space<vmem>>, %arg6: memref<18x96xf32, #tpu.memory_space<vmem>>) attributes {dimension_semantics = [#tpu.dimension_semantics<parallel>, #tpu.dimension_semantics<parallel>], iteration_bounds = array<i64: 2, 1>, scalar_prefetch = 0 : i64, scratch_operands = 1 : i64, tpu.core_type = #tpu.core_type<tc>, window_params = [{transform_indices = @transform_0, window_bounds = array<i64: 1, 16, 96>}, {pipeline_mode = #tpu.pipeline_mode<synchronous>, transform_indices = @transform_1, window_bounds = array<i64: 3, 96, 128>}, {transform_indices = @transform_2, window_bounds = array<i64: 1, 1, 1, 128>}, {transform_indices = @transform_3, window_bounds = array<i64: 1, 1, 1, 128>}]} {
    %c0 = arith.constant 0 : index
    %c0_0 = arith.constant 0 : index
    %c0_1 = arith.constant 0 : index
    %0 = vector.load %arg2[%c0, %c0_0, %c0_1] : memref<1x16x96xf32, #tpu.memory_space<vmem>>, vector<1x16x96xf32>
    %1 = vector.shape_cast %0 : vector<1x16x96xf32> to vector<16x96xf32>
    %c1 = arith.constant 1 : index
    %c0_2 = arith.constant 0 : index
    %2 = vector.load %arg6[%c1, %c0_2] : memref<18x96xf32, #tpu.memory_space<vmem>>, vector<16x96xf32>
    tpu.vector_store %arg6[%c1, %c0_2], %1 {strides = array<i32>} : memref<18x96xf32, #tpu.memory_space<vmem>>, vector<16x96xf32>,
    %cst = arith.constant 0.000000e+00 : f32
    %3 = vector.broadcast %cst : f32 to vector<1x96xf32>
    %c0_3 = arith.constant 0 : index
    %c0_4 = arith.constant 0 : index
    %4 = vector.load %arg6[%c0_3, %c0_4] : memref<18x96xf32, #tpu.memory_space<vmem>>, vector<1x96xf32>
    tpu.vector_store %arg6[%c0_3, %c0_4], %3 {strides = array<i32>} : memref<18x96xf32, #tpu.memory_space<vmem>>, vector<1x96xf32>,
    %c17 = arith.constant 17 : index
    %c0_5 = arith.constant 0 : index
    %5 = vector.load %arg6[%c17, %c0_5] : memref<18x96xf32, #tpu.memory_space<vmem>>, vector<1x96xf32>
    tpu.vector_store %arg6[%c17, %c0_5], %3 {strides = array<i32>} : memref<18x96xf32, #tpu.memory_space<vmem>>, vector<1x96xf32>,
    %c0_6 = arith.constant 0 : index
    %c0_7 = arith.constant 0 : index
    %6 = vector.load %arg6[%c0_6, %c0_7] : memref<18x96xf32, #tpu.memory_space<vmem>>, vector<16x96xf32>
    %c0_8 = arith.constant 0 : index
    %c0_9 = arith.constant 0 : index
    %c0_10 = arith.constant 0 : index
    %7 = vector.load %arg3[%c0_8, %c0_9, %c0_10] : memref<3x96x128xf32, #tpu.memory_space<vmem>>, vector<1x96x128xf32>
    %8 = vector.shape_cast %7 : vector<1x96x128xf32> to vector<96x128xf32>
    %cst_11 = arith.constant dense<0.000000e+00> : vector<16x128xf32>
    %9 = tpu.matmul %6, %8, %cst_11 {dimension_numbers = #tpu.dot_dimension_numbers<[1], [0], [0], [1], [0, 0, 1, 1], [], []>} : vector<16x96xf32>, vector<96x128xf32>, vector<16x128xf32> -> vector<16x128xf32>
    %c1_12 = arith.constant 1 : index
    %c0_13 = arith.constant 0 : index
    %10 = vector.load %arg6[%c1_12, %c0_13] : memref<18x96xf32, #tpu.memory_space<vmem>>, vector<16x96xf32>
    %c1_14 = arith.constant 1 : index
    %c0_15 = arith.constant 0 : index
    %c0_16 = arith.constant 0 : index
    %11 = vector.load %arg3[%c1_14, %c0_15, %c0_16] : memref<3x96x128xf32, #tpu.memory_space<vmem>>, vector<1x96x128xf32>
    %12 = vector.shape_cast %11 : vector<1x96x128xf32> to vector<96x128xf32>
    %cst_17 = arith.constant dense<0.000000e+00> : vector<16x128xf32>
    %13 = tpu.matmul %10, %12, %cst_17 {dimension_numbers = #tpu.dot_dimension_numbers<[1], [0], [0], [1], [0, 0, 1, 1], [], []>} : vector<16x96xf32>, vector<96x128xf32>, vector<16x128xf32> -> vector<16x128xf32>
    %14 = arith.addf %9, %13 : vector<16x128xf32>
    %c2 = arith.constant 2 : index
    %c0_18 = arith.constant 0 : index
    %15 = vector.load %arg6[%c2, %c0_18] : memref<18x96xf32, #tpu.memory_space<vmem>>, vector<16x96xf32>
    %c2_19 = arith.constant 2 : index
    %c0_20 = arith.constant 0 : index
    %c0_21 = arith.constant 0 : index
    %16 = vector.load %arg3[%c2_19, %c0_20, %c0_21] : memref<3x96x128xf32, #tpu.memory_space<vmem>>, vector<1x96x128xf32>
    %17 = vector.shape_cast %16 : vector<1x96x128xf32> to vector<96x128xf32>
    %cst_22 = arith.constant dense<0.000000e+00> : vector<16x128xf32>
    %18 = tpu.matmul %15, %17, %cst_22 {dimension_numbers = #tpu.dot_dimension_numbers<[1], [0], [0], [1], [0, 0, 1, 1], [], []>} : vector<16x96xf32>, vector<96x128xf32>, vector<16x128xf32> -> vector<16x128xf32>
    %19 = arith.addf %14, %18 : vector<16x128xf32>
    %cst_23 = arith.constant dense<0.000000e+00> : vector<128xf32>
    %20 = vector.multi_reduction <add>, %19, %cst_23 [0] : vector<16x128xf32> to vector<128xf32>
    %21 = vector.shape_cast %20 : vector<128xf32> to vector<1x128xf32>
    %22 = vector.shape_cast %21 : vector<1x128xf32> to vector<1x1x1x128xf32>
    %c0_24 = arith.constant 0 : index
    %c0_25 = arith.constant 0 : index
    %c0_26 = arith.constant 0 : index
    %c0_27 = arith.constant 0 : index
    %23 = vector.load %arg4[%c0_24, %c0_25, %c0_26, %c0_27] : memref<1x1x1x128xf32, #tpu.memory_space<vmem>>, vector<1x1x1x128xf32>
    tpu.vector_store %arg4[%c0_24, %c0_25, %c0_26, %c0_27], %22 {strides = array<i32>} : memref<1x1x1x128xf32, #tpu.memory_space<vmem>>, vector<1x1x1x128xf32>,
    %24 = arith.mulf %19, %19 : vector<16x128xf32>
    %cst_28 = arith.constant dense<0.000000e+00> : vector<128xf32>
    %25 = vector.multi_reduction <add>, %24, %cst_28 [0] : vector<16x128xf32> to vector<128xf32>
    %26 = vector.shape_cast %25 : vector<128xf32> to vector<1x128xf32>
    %27 = vector.shape_cast %26 : vector<1x128xf32> to vector<1x1x1x128xf32>
    %c0_29 = arith.constant 0 : index
    %c0_30 = arith.constant 0 : index
    %c0_31 = arith.constant 0 : index
    %c0_32 = arith.constant 0 : index
    %28 = vector.load %arg5[%c0_29, %c0_30, %c0_31, %c0_32] : memref<1x1x1x128xf32, #tpu.memory_space<vmem>>, vector<1x1x1x128xf32>
    tpu.vector_store %arg5[%c0_29, %c0_30, %c0_31, %c0_32], %27 {strides = array<i32>} : memref<1x1x1x128xf32, #tpu.memory_space<vmem>>, vector<1x1x1x128xf32>,
    return
  }
  func.func @transform_0(%arg0: i32, %arg1: i32) -> (i32, i32, i32) {
    %c0_i32 = arith.constant 0 : i32
    %c0_i32_0 = arith.constant 0 : i32
    return %arg0, %arg1, %c0_i32 : i32, i32, i32
  }
  func.func @transform_1(%arg0: i32, %arg1: i32) -> (i32, i32, i32) {
    %c0_i32 = arith.constant 0 : i32
    %c0_i32_0 = arith.constant 0 : i32
    %c0_i32_1 = arith.constant 0 : i32
    %c0_i32_2 = arith.constant 0 : i32
    return %c0_i32, %c0_i32_0, %c0_i32_1 : i32, i32, i32
  }
  func.func @transform_2(%arg0: i32, %arg1: i32) -> (i32, i32, i32, i32) {
    %c0_i32 = arith.constant 0 : i32
    %c0_i32_0 = arith.constant 0 : i32
    %c0_i32_1 = arith.constant 0 : i32
    return %arg0, %arg1, %c0_i32, %c0_i32_0 : i32, i32, i32, i32
  }
  func.func @transform_3(%arg0: i32, %arg1: i32) -> (i32, i32, i32, i32) {
    %c0_i32 = arith.constant 0 : i32
    %c0_i32_0 = arith.constant 0 : i32
    %c0_i32_1 = arith.constant 0 : i32
    return %arg0, %arg1, %c0_i32, %c0_i32_0 : i32, i32, i32, i32
  }
}

module attributes {stable_mosaic.version = 11 : i64} {
  func.func @out_kernel(%arg0: i32, %arg1: i32, %arg2: memref<1x16x96xf32, #tpu.memory_space<vmem>>, %arg3: memref<3x96x128xf32, #tpu.memory_space<vmem>>, %arg4: memref<1x128xf32, #tpu.memory_space<vmem>>, %arg5: memref<1x128xf32, #tpu.memory_space<vmem>>, %arg6: memref<1x16x128xf32, #tpu.memory_space<vmem>>, %arg7: memref<18x96xf32, #tpu.memory_space<vmem>>) attributes {dimension_semantics = [#tpu.dimension_semantics<parallel>, #tpu.dimension_semantics<parallel>], iteration_bounds = array<i64: 2, 1>, scalar_prefetch = 0 : i64, scratch_operands = 1 : i64, tpu.core_type = #tpu.core_type<tc>, window_params = [{transform_indices = @transform_0, window_bounds = array<i64: 1, 16, 96>}, {pipeline_mode = #tpu.pipeline_mode<synchronous>, transform_indices = @transform_1, window_bounds = array<i64: 3, 96, 128>}, {pipeline_mode = #tpu.pipeline_mode<synchronous>, transform_indices = @transform_2, window_bounds = array<i64: 1, 128>}, {pipeline_mode = #tpu.pipeline_mode<synchronous>, transform_indices = @transform_3, window_bounds = array<i64: 1, 128>}, {transform_indices = @transform_4, window_bounds = array<i64: 1, 16, 128>}]} {
    %c0 = arith.constant 0 : index
    %c0_0 = arith.constant 0 : index
    %c0_1 = arith.constant 0 : index
    %0 = vector.load %arg2[%c0, %c0_0, %c0_1] : memref<1x16x96xf32, #tpu.memory_space<vmem>>, vector<1x16x96xf32>
    %1 = vector.shape_cast %0 : vector<1x16x96xf32> to vector<16x96xf32>
    %c1 = arith.constant 1 : index
    %c0_2 = arith.constant 0 : index
    %2 = vector.load %arg7[%c1, %c0_2] : memref<18x96xf32, #tpu.memory_space<vmem>>, vector<16x96xf32>
    tpu.vector_store %arg7[%c1, %c0_2], %1 {strides = array<i32>} : memref<18x96xf32, #tpu.memory_space<vmem>>, vector<16x96xf32>,
    %cst = arith.constant 0.000000e+00 : f32
    %3 = vector.broadcast %cst : f32 to vector<1x96xf32>
    %c0_3 = arith.constant 0 : index
    %c0_4 = arith.constant 0 : index
    %4 = vector.load %arg7[%c0_3, %c0_4] : memref<18x96xf32, #tpu.memory_space<vmem>>, vector<1x96xf32>
    tpu.vector_store %arg7[%c0_3, %c0_4], %3 {strides = array<i32>} : memref<18x96xf32, #tpu.memory_space<vmem>>, vector<1x96xf32>,
    %c17 = arith.constant 17 : index
    %c0_5 = arith.constant 0 : index
    %5 = vector.load %arg7[%c17, %c0_5] : memref<18x96xf32, #tpu.memory_space<vmem>>, vector<1x96xf32>
    tpu.vector_store %arg7[%c17, %c0_5], %3 {strides = array<i32>} : memref<18x96xf32, #tpu.memory_space<vmem>>, vector<1x96xf32>,
    %c0_6 = arith.constant 0 : index
    %c0_7 = arith.constant 0 : index
    %6 = vector.load %arg7[%c0_6, %c0_7] : memref<18x96xf32, #tpu.memory_space<vmem>>, vector<16x96xf32>
    %c0_8 = arith.constant 0 : index
    %c0_9 = arith.constant 0 : index
    %c0_10 = arith.constant 0 : index
    %7 = vector.load %arg3[%c0_8, %c0_9, %c0_10] : memref<3x96x128xf32, #tpu.memory_space<vmem>>, vector<1x96x128xf32>
    %8 = vector.shape_cast %7 : vector<1x96x128xf32> to vector<96x128xf32>
    %cst_11 = arith.constant dense<0.000000e+00> : vector<16x128xf32>
    %9 = tpu.matmul %6, %8, %cst_11 {dimension_numbers = #tpu.dot_dimension_numbers<[1], [0], [0], [1], [0, 0, 1, 1], [], []>} : vector<16x96xf32>, vector<96x128xf32>, vector<16x128xf32> -> vector<16x128xf32>
    %c1_12 = arith.constant 1 : index
    %c0_13 = arith.constant 0 : index
    %10 = vector.load %arg7[%c1_12, %c0_13] : memref<18x96xf32, #tpu.memory_space<vmem>>, vector<16x96xf32>
    %c1_14 = arith.constant 1 : index
    %c0_15 = arith.constant 0 : index
    %c0_16 = arith.constant 0 : index
    %11 = vector.load %arg3[%c1_14, %c0_15, %c0_16] : memref<3x96x128xf32, #tpu.memory_space<vmem>>, vector<1x96x128xf32>
    %12 = vector.shape_cast %11 : vector<1x96x128xf32> to vector<96x128xf32>
    %cst_17 = arith.constant dense<0.000000e+00> : vector<16x128xf32>
    %13 = tpu.matmul %10, %12, %cst_17 {dimension_numbers = #tpu.dot_dimension_numbers<[1], [0], [0], [1], [0, 0, 1, 1], [], []>} : vector<16x96xf32>, vector<96x128xf32>, vector<16x128xf32> -> vector<16x128xf32>
    %14 = arith.addf %9, %13 : vector<16x128xf32>
    %c2 = arith.constant 2 : index
    %c0_18 = arith.constant 0 : index
    %15 = vector.load %arg7[%c2, %c0_18] : memref<18x96xf32, #tpu.memory_space<vmem>>, vector<16x96xf32>
    %c2_19 = arith.constant 2 : index
    %c0_20 = arith.constant 0 : index
    %c0_21 = arith.constant 0 : index
    %16 = vector.load %arg3[%c2_19, %c0_20, %c0_21] : memref<3x96x128xf32, #tpu.memory_space<vmem>>, vector<1x96x128xf32>
    %17 = vector.shape_cast %16 : vector<1x96x128xf32> to vector<96x128xf32>
    %cst_22 = arith.constant dense<0.000000e+00> : vector<16x128xf32>
    %18 = tpu.matmul %15, %17, %cst_22 {dimension_numbers = #tpu.dot_dimension_numbers<[1], [0], [0], [1], [0, 0, 1, 1], [], []>} : vector<16x96xf32>, vector<96x128xf32>, vector<16x128xf32> -> vector<16x128xf32>
    %19 = arith.addf %14, %18 : vector<16x128xf32>
    %c0_23 = arith.constant 0 : index
    %c0_24 = arith.constant 0 : index
    %20 = vector.load %arg4[%c0_23, %c0_24] : memref<1x128xf32, #tpu.memory_space<vmem>>, vector<1x128xf32>
    %21 = vector.broadcast %20 : vector<1x128xf32> to vector<16x128xf32>
    %22 = arith.mulf %19, %21 : vector<16x128xf32>
    %c0_25 = arith.constant 0 : index
    %c0_26 = arith.constant 0 : index
    %23 = vector.load %arg5[%c0_25, %c0_26] : memref<1x128xf32, #tpu.memory_space<vmem>>, vector<1x128xf32>
    %24 = vector.broadcast %23 : vector<1x128xf32> to vector<16x128xf32>
    %25 = arith.addf %22, %24 : vector<16x128xf32>
    %cst_27 = arith.constant 0.000000e+00 : f32
    %26 = vector.broadcast %cst_27 : f32 to vector<16x128xf32>
    %27 = arith.maximumf %25, %26 : vector<16x128xf32>
    %28 = vector.shape_cast %27 : vector<16x128xf32> to vector<1x16x128xf32>
    %c0_28 = arith.constant 0 : index
    %c0_29 = arith.constant 0 : index
    %c0_30 = arith.constant 0 : index
    %29 = vector.load %arg6[%c0_28, %c0_29, %c0_30] : memref<1x16x128xf32, #tpu.memory_space<vmem>>, vector<1x16x128xf32>
    tpu.vector_store %arg6[%c0_28, %c0_29, %c0_30], %28 {strides = array<i32>} : memref<1x16x128xf32, #tpu.memory_space<vmem>>, vector<1x16x128xf32>,
    return
  }
  func.func @transform_0(%arg0: i32, %arg1: i32) -> (i32, i32, i32) {
    %c0_i32 = arith.constant 0 : i32
    %c0_i32_0 = arith.constant 0 : i32
    return %arg0, %arg1, %c0_i32 : i32, i32, i32
  }
  func.func @transform_1(%arg0: i32, %arg1: i32) -> (i32, i32, i32) {
    %c0_i32 = arith.constant 0 : i32
    %c0_i32_0 = arith.constant 0 : i32
    %c0_i32_1 = arith.constant 0 : i32
    %c0_i32_2 = arith.constant 0 : i32
    return %c0_i32, %c0_i32_0, %c0_i32_1 : i32, i32, i32
  }
  func.func @transform_2(%arg0: i32, %arg1: i32) -> (i32, i32) {
    %c0_i32 = arith.constant 0 : i32
    %c0_i32_0 = arith.constant 0 : i32
    %c0_i32_1 = arith.constant 0 : i32
    return %c0_i32, %c0_i32_0 : i32, i32
  }
  func.func @transform_3(%arg0: i32, %arg1: i32) -> (i32, i32) {
    %c0_i32 = arith.constant 0 : i32
    %c0_i32_0 = arith.constant 0 : i32
    %c0_i32_1 = arith.constant 0 : i32
    return %c0_i32, %c0_i32_0 : i32, i32
  }
  func.func @transform_4(%arg0: i32, %arg1: i32) -> (i32, i32, i32) {
    %c0_i32 = arith.constant 0 : i32
    %c0_i32_0 = arith.constant 0 : i32
    return %arg0, %arg1, %c0_i32 : i32, i32, i32
  }
}

module attributes {stable_mosaic.version = 11 : i64} {
  func.func @stats_kernel(%arg0: i32, %arg1: i32, %arg2: memref<1x16x128xf32, #tpu.memory_space<vmem>>, %arg3: memref<3x128x128xf32, #tpu.memory_space<vmem>>, %arg4: memref<1x1x1x128xf32, #tpu.memory_space<vmem>>, %arg5: memref<1x1x1x128xf32, #tpu.memory_space<vmem>>, %arg6: memref<18x128xf32, #tpu.memory_space<vmem>>) attributes {dimension_semantics = [#tpu.dimension_semantics<parallel>, #tpu.dimension_semantics<parallel>], iteration_bounds = array<i64: 2, 1>, scalar_prefetch = 0 : i64, scratch_operands = 1 : i64, tpu.core_type = #tpu.core_type<tc>, window_params = [{transform_indices = @transform_0, window_bounds = array<i64: 1, 16, 128>}, {pipeline_mode = #tpu.pipeline_mode<synchronous>, transform_indices = @transform_1, window_bounds = array<i64: 3, 128, 128>}, {transform_indices = @transform_2, window_bounds = array<i64: 1, 1, 1, 128>}, {transform_indices = @transform_3, window_bounds = array<i64: 1, 1, 1, 128>}]} {
    %c0 = arith.constant 0 : index
    %c0_0 = arith.constant 0 : index
    %c0_1 = arith.constant 0 : index
    %0 = vector.load %arg2[%c0, %c0_0, %c0_1] : memref<1x16x128xf32, #tpu.memory_space<vmem>>, vector<1x16x128xf32>
    %1 = vector.shape_cast %0 : vector<1x16x128xf32> to vector<16x128xf32>
    %c1 = arith.constant 1 : index
    %c0_2 = arith.constant 0 : index
    %2 = vector.load %arg6[%c1, %c0_2] : memref<18x128xf32, #tpu.memory_space<vmem>>, vector<16x128xf32>
    tpu.vector_store %arg6[%c1, %c0_2], %1 {strides = array<i32>} : memref<18x128xf32, #tpu.memory_space<vmem>>, vector<16x128xf32>,
    %cst = arith.constant 0.000000e+00 : f32
    %3 = vector.broadcast %cst : f32 to vector<1x128xf32>
    %c0_3 = arith.constant 0 : index
    %c0_4 = arith.constant 0 : index
    %4 = vector.load %arg6[%c0_3, %c0_4] : memref<18x128xf32, #tpu.memory_space<vmem>>, vector<1x128xf32>
    tpu.vector_store %arg6[%c0_3, %c0_4], %3 {strides = array<i32>} : memref<18x128xf32, #tpu.memory_space<vmem>>, vector<1x128xf32>,
    %c17 = arith.constant 17 : index
    %c0_5 = arith.constant 0 : index
    %5 = vector.load %arg6[%c17, %c0_5] : memref<18x128xf32, #tpu.memory_space<vmem>>, vector<1x128xf32>
    tpu.vector_store %arg6[%c17, %c0_5], %3 {strides = array<i32>} : memref<18x128xf32, #tpu.memory_space<vmem>>, vector<1x128xf32>,
    %c0_6 = arith.constant 0 : index
    %c0_7 = arith.constant 0 : index
    %6 = vector.load %arg6[%c0_6, %c0_7] : memref<18x128xf32, #tpu.memory_space<vmem>>, vector<16x128xf32>
    %c0_8 = arith.constant 0 : index
    %c0_9 = arith.constant 0 : index
    %c0_10 = arith.constant 0 : index
    %7 = vector.load %arg3[%c0_8, %c0_9, %c0_10] : memref<3x128x128xf32, #tpu.memory_space<vmem>>, vector<1x128x128xf32>
    %8 = vector.shape_cast %7 : vector<1x128x128xf32> to vector<128x128xf32>
    %cst_11 = arith.constant dense<0.000000e+00> : vector<16x128xf32>
    %9 = tpu.matmul %6, %8, %cst_11 {dimension_numbers = #tpu.dot_dimension_numbers<[1], [0], [0], [1], [0, 0, 1, 1], [], []>} : vector<16x128xf32>, vector<128x128xf32>, vector<16x128xf32> -> vector<16x128xf32>
    %c1_12 = arith.constant 1 : index
    %c0_13 = arith.constant 0 : index
    %10 = vector.load %arg6[%c1_12, %c0_13] : memref<18x128xf32, #tpu.memory_space<vmem>>, vector<16x128xf32>
    %c1_14 = arith.constant 1 : index
    %c0_15 = arith.constant 0 : index
    %c0_16 = arith.constant 0 : index
    %11 = vector.load %arg3[%c1_14, %c0_15, %c0_16] : memref<3x128x128xf32, #tpu.memory_space<vmem>>, vector<1x128x128xf32>
    %12 = vector.shape_cast %11 : vector<1x128x128xf32> to vector<128x128xf32>
    %cst_17 = arith.constant dense<0.000000e+00> : vector<16x128xf32>
    %13 = tpu.matmul %10, %12, %cst_17 {dimension_numbers = #tpu.dot_dimension_numbers<[1], [0], [0], [1], [0, 0, 1, 1], [], []>} : vector<16x128xf32>, vector<128x128xf32>, vector<16x128xf32> -> vector<16x128xf32>
    %14 = arith.addf %9, %13 : vector<16x128xf32>
    %c2 = arith.constant 2 : index
    %c0_18 = arith.constant 0 : index
    %15 = vector.load %arg6[%c2, %c0_18] : memref<18x128xf32, #tpu.memory_space<vmem>>, vector<16x128xf32>
    %c2_19 = arith.constant 2 : index
    %c0_20 = arith.constant 0 : index
    %c0_21 = arith.constant 0 : index
    %16 = vector.load %arg3[%c2_19, %c0_20, %c0_21] : memref<3x128x128xf32, #tpu.memory_space<vmem>>, vector<1x128x128xf32>
    %17 = vector.shape_cast %16 : vector<1x128x128xf32> to vector<128x128xf32>
    %cst_22 = arith.constant dense<0.000000e+00> : vector<16x128xf32>
    %18 = tpu.matmul %15, %17, %cst_22 {dimension_numbers = #tpu.dot_dimension_numbers<[1], [0], [0], [1], [0, 0, 1, 1], [], []>} : vector<16x128xf32>, vector<128x128xf32>, vector<16x128xf32> -> vector<16x128xf32>
    %19 = arith.addf %14, %18 : vector<16x128xf32>
    %cst_23 = arith.constant dense<0.000000e+00> : vector<128xf32>
    %20 = vector.multi_reduction <add>, %19, %cst_23 [0] : vector<16x128xf32> to vector<128xf32>
    %21 = vector.shape_cast %20 : vector<128xf32> to vector<1x128xf32>
    %22 = vector.shape_cast %21 : vector<1x128xf32> to vector<1x1x1x128xf32>
    %c0_24 = arith.constant 0 : index
    %c0_25 = arith.constant 0 : index
    %c0_26 = arith.constant 0 : index
    %c0_27 = arith.constant 0 : index
    %23 = vector.load %arg4[%c0_24, %c0_25, %c0_26, %c0_27] : memref<1x1x1x128xf32, #tpu.memory_space<vmem>>, vector<1x1x1x128xf32>
    tpu.vector_store %arg4[%c0_24, %c0_25, %c0_26, %c0_27], %22 {strides = array<i32>} : memref<1x1x1x128xf32, #tpu.memory_space<vmem>>, vector<1x1x1x128xf32>,
    %24 = arith.mulf %19, %19 : vector<16x128xf32>
    %cst_28 = arith.constant dense<0.000000e+00> : vector<128xf32>
    %25 = vector.multi_reduction <add>, %24, %cst_28 [0] : vector<16x128xf32> to vector<128xf32>
    %26 = vector.shape_cast %25 : vector<128xf32> to vector<1x128xf32>
    %27 = vector.shape_cast %26 : vector<1x128xf32> to vector<1x1x1x128xf32>
    %c0_29 = arith.constant 0 : index
    %c0_30 = arith.constant 0 : index
    %c0_31 = arith.constant 0 : index
    %c0_32 = arith.constant 0 : index
    %28 = vector.load %arg5[%c0_29, %c0_30, %c0_31, %c0_32] : memref<1x1x1x128xf32, #tpu.memory_space<vmem>>, vector<1x1x1x128xf32>
    tpu.vector_store %arg5[%c0_29, %c0_30, %c0_31, %c0_32], %27 {strides = array<i32>} : memref<1x1x1x128xf32, #tpu.memory_space<vmem>>, vector<1x1x1x128xf32>,
    return
  }
  func.func @transform_0(%arg0: i32, %arg1: i32) -> (i32, i32, i32) {
    %c0_i32 = arith.constant 0 : i32
    %c0_i32_0 = arith.constant 0 : i32
    return %arg0, %arg1, %c0_i32 : i32, i32, i32
  }
  func.func @transform_1(%arg0: i32, %arg1: i32) -> (i32, i32, i32) {
    %c0_i32 = arith.constant 0 : i32
    %c0_i32_0 = arith.constant 0 : i32
    %c0_i32_1 = arith.constant 0 : i32
    %c0_i32_2 = arith.constant 0 : i32
    return %c0_i32, %c0_i32_0, %c0_i32_1 : i32, i32, i32
  }
  func.func @transform_2(%arg0: i32, %arg1: i32) -> (i32, i32, i32, i32) {
    %c0_i32 = arith.constant 0 : i32
    %c0_i32_0 = arith.constant 0 : i32
    %c0_i32_1 = arith.constant 0 : i32
    return %arg0, %arg1, %c0_i32, %c0_i32_0 : i32, i32, i32, i32
  }
  func.func @transform_3(%arg0: i32, %arg1: i32) -> (i32, i32, i32, i32) {
    %c0_i32 = arith.constant 0 : i32
    %c0_i32_0 = arith.constant 0 : i32
    %c0_i32_1 = arith.constant 0 : i32
    return %arg0, %arg1, %c0_i32, %c0_i32_0 : i32, i32, i32, i32
  }
}

module attributes {stable_mosaic.version = 11 : i64} {
  func.func @out_kernel(%arg0: i32, %arg1: i32, %arg2: memref<1x16x128xf32, #tpu.memory_space<vmem>>, %arg3: memref<3x128x128xf32, #tpu.memory_space<vmem>>, %arg4: memref<1x128xf32, #tpu.memory_space<vmem>>, %arg5: memref<1x128xf32, #tpu.memory_space<vmem>>, %arg6: memref<1x16x128xf32, #tpu.memory_space<vmem>>, %arg7: memref<18x128xf32, #tpu.memory_space<vmem>>) attributes {dimension_semantics = [#tpu.dimension_semantics<parallel>, #tpu.dimension_semantics<parallel>], iteration_bounds = array<i64: 2, 1>, scalar_prefetch = 0 : i64, scratch_operands = 1 : i64, tpu.core_type = #tpu.core_type<tc>, window_params = [{transform_indices = @transform_0, window_bounds = array<i64: 1, 16, 128>}, {pipeline_mode = #tpu.pipeline_mode<synchronous>, transform_indices = @transform_1, window_bounds = array<i64: 3, 128, 128>}, {pipeline_mode = #tpu.pipeline_mode<synchronous>, transform_indices = @transform_2, window_bounds = array<i64: 1, 128>}, {pipeline_mode = #tpu.pipeline_mode<synchronous>, transform_indices = @transform_3, window_bounds = array<i64: 1, 128>}, {transform_indices = @transform_4, window_bounds = array<i64: 1, 16, 128>}]} {
    %c0 = arith.constant 0 : index
    %c0_0 = arith.constant 0 : index
    %c0_1 = arith.constant 0 : index
    %0 = vector.load %arg2[%c0, %c0_0, %c0_1] : memref<1x16x128xf32, #tpu.memory_space<vmem>>, vector<1x16x128xf32>
    %1 = vector.shape_cast %0 : vector<1x16x128xf32> to vector<16x128xf32>
    %c1 = arith.constant 1 : index
    %c0_2 = arith.constant 0 : index
    %2 = vector.load %arg7[%c1, %c0_2] : memref<18x128xf32, #tpu.memory_space<vmem>>, vector<16x128xf32>
    tpu.vector_store %arg7[%c1, %c0_2], %1 {strides = array<i32>} : memref<18x128xf32, #tpu.memory_space<vmem>>, vector<16x128xf32>,
    %cst = arith.constant 0.000000e+00 : f32
    %3 = vector.broadcast %cst : f32 to vector<1x128xf32>
    %c0_3 = arith.constant 0 : index
    %c0_4 = arith.constant 0 : index
    %4 = vector.load %arg7[%c0_3, %c0_4] : memref<18x128xf32, #tpu.memory_space<vmem>>, vector<1x128xf32>
    tpu.vector_store %arg7[%c0_3, %c0_4], %3 {strides = array<i32>} : memref<18x128xf32, #tpu.memory_space<vmem>>, vector<1x128xf32>,
    %c17 = arith.constant 17 : index
    %c0_5 = arith.constant 0 : index
    %5 = vector.load %arg7[%c17, %c0_5] : memref<18x128xf32, #tpu.memory_space<vmem>>, vector<1x128xf32>
    tpu.vector_store %arg7[%c17, %c0_5], %3 {strides = array<i32>} : memref<18x128xf32, #tpu.memory_space<vmem>>, vector<1x128xf32>,
    %c0_6 = arith.constant 0 : index
    %c0_7 = arith.constant 0 : index
    %6 = vector.load %arg7[%c0_6, %c0_7] : memref<18x128xf32, #tpu.memory_space<vmem>>, vector<16x128xf32>
    %c0_8 = arith.constant 0 : index
    %c0_9 = arith.constant 0 : index
    %c0_10 = arith.constant 0 : index
    %7 = vector.load %arg3[%c0_8, %c0_9, %c0_10] : memref<3x128x128xf32, #tpu.memory_space<vmem>>, vector<1x128x128xf32>
    %8 = vector.shape_cast %7 : vector<1x128x128xf32> to vector<128x128xf32>
    %cst_11 = arith.constant dense<0.000000e+00> : vector<16x128xf32>
    %9 = tpu.matmul %6, %8, %cst_11 {dimension_numbers = #tpu.dot_dimension_numbers<[1], [0], [0], [1], [0, 0, 1, 1], [], []>} : vector<16x128xf32>, vector<128x128xf32>, vector<16x128xf32> -> vector<16x128xf32>
    %c1_12 = arith.constant 1 : index
    %c0_13 = arith.constant 0 : index
    %10 = vector.load %arg7[%c1_12, %c0_13] : memref<18x128xf32, #tpu.memory_space<vmem>>, vector<16x128xf32>
    %c1_14 = arith.constant 1 : index
    %c0_15 = arith.constant 0 : index
    %c0_16 = arith.constant 0 : index
    %11 = vector.load %arg3[%c1_14, %c0_15, %c0_16] : memref<3x128x128xf32, #tpu.memory_space<vmem>>, vector<1x128x128xf32>
    %12 = vector.shape_cast %11 : vector<1x128x128xf32> to vector<128x128xf32>
    %cst_17 = arith.constant dense<0.000000e+00> : vector<16x128xf32>
    %13 = tpu.matmul %10, %12, %cst_17 {dimension_numbers = #tpu.dot_dimension_numbers<[1], [0], [0], [1], [0, 0, 1, 1], [], []>} : vector<16x128xf32>, vector<128x128xf32>, vector<16x128xf32> -> vector<16x128xf32>
    %14 = arith.addf %9, %13 : vector<16x128xf32>
    %c2 = arith.constant 2 : index
    %c0_18 = arith.constant 0 : index
    %15 = vector.load %arg7[%c2, %c0_18] : memref<18x128xf32, #tpu.memory_space<vmem>>, vector<16x128xf32>
    %c2_19 = arith.constant 2 : index
    %c0_20 = arith.constant 0 : index
    %c0_21 = arith.constant 0 : index
    %16 = vector.load %arg3[%c2_19, %c0_20, %c0_21] : memref<3x128x128xf32, #tpu.memory_space<vmem>>, vector<1x128x128xf32>
    %17 = vector.shape_cast %16 : vector<1x128x128xf32> to vector<128x128xf32>
    %cst_22 = arith.constant dense<0.000000e+00> : vector<16x128xf32>
    %18 = tpu.matmul %15, %17, %cst_22 {dimension_numbers = #tpu.dot_dimension_numbers<[1], [0], [0], [1], [0, 0, 1, 1], [], []>} : vector<16x128xf32>, vector<128x128xf32>, vector<16x128xf32> -> vector<16x128xf32>
    %19 = arith.addf %14, %18 : vector<16x128xf32>
    %c0_23 = arith.constant 0 : index
    %c0_24 = arith.constant 0 : index
    %20 = vector.load %arg4[%c0_23, %c0_24] : memref<1x128xf32, #tpu.memory_space<vmem>>, vector<1x128xf32>
    %21 = vector.broadcast %20 : vector<1x128xf32> to vector<16x128xf32>
    %22 = arith.mulf %19, %21 : vector<16x128xf32>
    %c0_25 = arith.constant 0 : index
    %c0_26 = arith.constant 0 : index
    %23 = vector.load %arg5[%c0_25, %c0_26] : memref<1x128xf32, #tpu.memory_space<vmem>>, vector<1x128xf32>
    %24 = vector.broadcast %23 : vector<1x128xf32> to vector<16x128xf32>
    %25 = arith.addf %22, %24 : vector<16x128xf32>
    %cst_27 = arith.constant 0.000000e+00 : f32
    %26 = vector.broadcast %cst_27 : f32 to vector<16x128xf32>
    %27 = arith.maximumf %25, %26 : vector<16x128xf32>
    %28 = vector.shape_cast %27 : vector<16x128xf32> to vector<1x16x128xf32>
    %c0_28 = arith.constant 0 : index
    %c0_29 = arith.constant 0 : index
    %c0_30 = arith.constant 0 : index
    %29 = vector.load %arg6[%c0_28, %c0_29, %c0_30] : memref<1x16x128xf32, #tpu.memory_space<vmem>>, vector<1x16x128xf32>
    tpu.vector_store %arg6[%c0_28, %c0_29, %c0_30], %28 {strides = array<i32>} : memref<1x16x128xf32, #tpu.memory_space<vmem>>, vector<1x16x128xf32>,
    return
  }
  func.func @transform_0(%arg0: i32, %arg1: i32) -> (i32, i32, i32) {
    %c0_i32 = arith.constant 0 : i32
    %c0_i32_0 = arith.constant 0 : i32
    return %arg0, %arg1, %c0_i32 : i32, i32, i32
  }
  func.func @transform_1(%arg0: i32, %arg1: i32) -> (i32, i32, i32) {
    %c0_i32 = arith.constant 0 : i32
    %c0_i32_0 = arith.constant 0 : i32
    %c0_i32_1 = arith.constant 0 : i32
    %c0_i32_2 = arith.constant 0 : i32
    return %c0_i32, %c0_i32_0, %c0_i32_1 : i32, i32, i32
  }
  func.func @transform_2(%arg0: i32, %arg1: i32) -> (i32, i32) {
    %c0_i32 = arith.constant 0 : i32
    %c0_i32_0 = arith.constant 0 : i32
    %c0_i32_1 = arith.constant 0 : i32
    return %c0_i32, %c0_i32_0 : i32, i32
  }
  func.func @transform_3(%arg0: i32, %arg1: i32) -> (i32, i32) {
    %c0_i32 = arith.constant 0 : i32
    %c0_i32_0 = arith.constant 0 : i32
    %c0_i32_1 = arith.constant 0 : i32
    return %c0_i32, %c0_i32_0 : i32, i32
  }
  func.func @transform_4(%arg0: i32, %arg1: i32) -> (i32, i32, i32) {
    %c0_i32 = arith.constant 0 : i32
    %c0_i32_0 = arith.constant 0 : i32
    return %arg0, %arg1, %c0_i32 : i32, i32, i32
  }
}

</mosaic_0001>

<bundles_post_ra>
// kernel: stack_decoder_forward.6
= control target key start
LH: loop header
LB: loop body
LE: loop exit
PB: predicated region body
PF: predicated region fallthrough
CT: control target
= control target key end

     0   :  { %s950_s12 = smov 0   ;;  %s952_s13 = smov 0   ;;  %s1107_s0 = inlined_call_operand.vmem [shape: f32[2,16,96], index: 0, kind: input, shape index: {}]   ;;  %s1108_s1 = inlined_call_operand.vmem [shape: f32[3,96,128], index: 1, kind: input, shape index: {}]   ;;  %s1109_s2 = inlined_call_operand.vmem [shape: f32[2,1,1,128], index: 2, kind: output, shape index: {0}]   ;;  %s1110_s3 = inlined_call_operand.vmem [shape: f32[2,1,1,128], index: 3, kind: output, shape index: {1}]  }
   0x1   :  { %s954_s14 = smov 0  }
   0x2 LB: > { %s26_s15 = sadd.s32 1, %s923_s13  ;;  %p645_p0 = scmp.ge.s32.totalorder %s927_s14, 1  ;;  %s927_s14 = sphi %s954_s14, %s14_s14   ;;  %s923_s13 = sphi %s952_s13, %s1112_s13   ;;  %s919_s12 = sphi %s950_s12, %s1111_s12  }
   0x3   : > { %p28_p1 = scmp.ge.s32.totalorder %s26_s15, 2  ;;  %p163_p2 = scmp.lt.s32.totalorder %s927_s14, 3 }
   0x5   : > { %s1114_s15 = smov (%p28_p1, %s26_s15), 0  ;;  %p164_p3 = pnand %p645_p0, %p163_p2 }
   0x6   : > { %v230_v0 = vld [vmem:[%s1108_s1] sm:$0xff] (!%p164_p3)  ;;  %v231_v1 = vld [vmem:[%s1108_s1 + $0x8] sm:$0xff] (!%p164_p3)  ;;  %v232_v2 = vld [vmem:[%s1108_s1 + $0x10] sm:$0xff] (!%p164_p3)  ;;  %p199_p4 = scmp.lt.s32.totalorder (!%p164_p3), %s919_s12, 1  ;;  %vm225_vm0 = vcmask (!%p164_p3), 778240   ;;  %v929_v8 = vmov (!%p164_p3), 0.0  }
   0x7   : > { %167 = sbr.rel (%p164_p3) target bundleno = 289 (0x121), region = 28  ;;  %v828_v3 = vpack.c.bf16 (!%p164_p3), %v231_v1, %v230_v0  ;;  %v233_v4 = vld [vmem:[%s1108_s1 + $0x18] sm:$0xff] (!%p164_p3)  ;;  %v234_v6 = vld [vmem:[%s1108_s1 + $0x20] sm:$0xff] (!%p164_p3)  ;;  %v235_v7 = vld [vmem:[%s1108_s1 + $0x28] sm:$0xff] (!%p164_p3)  ;;  %226 = vst.msk [vmem:[#allocation2] sm:$0x1] (!%p164_p3), %vm225_vm0, %v929_v8 }
   0x8   : > { %v832_v5 = vpack.c.bf16 (!%p164_p3), %v233_v4, %v232_v2  ;;  %227 = vst.msk [vmem:[#allocation2 + $0x11] sm:$0x1] (!%p164_p3), %vm225_vm0, %v929_v8  ;;  %v648_v9 = vld [vmem:[%s1108_s1 + $0x60] sm:$0xff] (!%p164_p3)  ;;  %v649_v10 = vld [vmem:[%s1108_s1 + $0x68] sm:$0xff] (!%p164_p3)  ;;  %vm222_vm1 = vcmask (!%p164_p3), 785408   ;;  %v836_v11 = vpack.c.bf16 (!%p164_p3), %v235_v7, %v234_v6  ;;  %v236_v12 = vld [vmem:[%s1108_s1 + $0x30] sm:$0xff] (!%p164_p3) }
   0x9   : > { %829 = vmatprep.subr.bf16.mxu0 (!%p164_p3), %v828_v3  ;;  %v804_v13 = vpack.c.bf16 (!%p164_p3), %v649_v10, %v648_v9  ;;  %v650_v14 = vld [vmem:[%s1108_s1 + $0x70] sm:$0xff] (!%p164_p3)  ;;  %v651_v15 = vld [vmem:[%s1108_s1 + $0x78] sm:$0xff] (!%p164_p3)  ;;  %v652_v20 = vld [vmem:[%s1108_s1 + $0x80] sm:$0xff] (!%p164_p3) }
   0xa   : > { %831 = vmatpush3.bf16.msra.mxu0 (!%p164_p3), %v828_v3  ;;  %v237_v16 = vld [vmem:[%s1108_s1 + $0x38] sm:$0xff] (!%p164_p3)  ;;  %v808_v19 = vpack.c.bf16 (!%p164_p3), %v651_v15, %v650_v14  ;;  %v653_v21 = vld [vmem:[%s1108_s1 + $0x88] sm:$0xff] (!%p164_p3)  ;;  %v238_v23 = vld [vmem:[%s1108_s1 + $0x40] sm:$0xff] (!%p164_p3) }
   0xb   : > { %833 = vmatprep.subr.bf16.mxu0 (!%p164_p3), %v832_v5  ;;  %805 = vmatprep.subr.bf16.mxu1 (!%p164_p3), %v804_v13  ;;  %v840_v22 = vpack.c.bf16 (!%p164_p3), %v237_v16, %v236_v12  ;;  %v812_v24 = vpack.c.bf16 (!%p164_p3), %v653_v21, %v652_v20  ;;  %v239_v25 = vld [vmem:[%s1108_s1 + $0x48] sm:$0xff] (!%p164_p3)  ;;  %v654_v26 = vld [vmem:[%s1108_s1 + $0x90] sm:$0xff] (!%p164_p3)  ;;  %v655_v27 = vld [vmem:[%s1108_s1 + $0x98] sm:$0xff] (!%p164_p3) }
   0xc   : > { %807 = vmatpush3.bf16.msra.mxu1 (!%p164_p3), %v804_v13  ;;  %v844_v28 = vpack.c.bf16 (!%p164_p3), %v239_v25, %v238_v23  ;;  %v240_v29 = vld [vmem:[%s1108_s1 + $0x50] sm:$0xff] (!%p164_p3)  ;;  %v241_v30 = vld [vmem:[%s1108_s1 + $0x58] sm:$0xff] (!%p164_p3)  ;;  %v816_v31 = vpack.c.bf16 (!%p164_p3), %v655_v27, %v654_v26  ;;  %v656_v32 = vld [vmem:[%s1108_s1 + $0xa0] sm:$0xff] (!%p164_p3) }
   0xd   : > { %809 = vmatprep.subr.bf16.mxu1 (!%p164_p3), %v808_v19  ;;  %v657_v34 = vld [vmem:[%s1108_s1 + $0xa8] sm:$0xff] (!%p164_p3)  ;;  %v848_v36 = vpack.c.bf16 (!%p164_p3), %v241_v30, %v240_v29  ;;  %v664_v37 = vld [vmem:[%s1108_s1 + $0xc0] sm:$0xff] (!%p164_p3)  ;;  %v658_v40 = vld [vmem:[%s1108_s1 + $0xb0] sm:$0xff] (!%p164_p3) }
   0xe   : > { %s1116_s12 = smov (!%p199_p4, %s919_s12), 1  ;;  %835 = vmatpush3.bf16.msra.mxu0 %v832_v5  ;;  %v820_v38 = vpack.c.bf16 %v657_v34, %v656_v32  ;;  %v665_v39 = vld [vmem:[%s1108_s1 + $0xc8] sm:$0xff]  ;;  %v659_v41 = vld [vmem:[%s1108_s1 + $0xb8] sm:$0xff]  ;;  %v666_v44 = vld [vmem:[%s1108_s1 + $0xd0] sm:$0xff] }
   0xf   : > { %s680_s5 = sshll.u32 %s1116_s12, 4  ;;  %837 = vmatprep.subr.bf16.mxu0 %v836_v11  ;;  %v852_v42 = vpack.c.bf16 %v665_v39, %v664_v37  ;;  %v824_v43 = vpack.c.bf16 %v659_v41, %v658_v40  ;;  %v667_v45 = vld [vmem:[%s1108_s1 + $0xd8] sm:$0xff]  ;;  %v668_v48 = vld [vmem:[%s1108_s1 + $0xe0] sm:$0xff]  ;;  %v669_v49 = vld [vmem:[%s1108_s1 + $0xe8] sm:$0xff]  ;;  %s213_s25 = scalar_lea.vmem %s1109_s2, %s1116_s12 }
  0x10   : > { %s206_s10 = scalar_lea.vmem %s1107_s0, %s680_s5  ;;  %811 = vmatpush3.bf16.msra.mxu1 %v808_v19  ;;  %v856_v47 = vpack.c.bf16 %v667_v45, %v666_v44  ;;  %v860_v52 = vpack.c.bf16 %v669_v49, %v668_v48  ;;  %v670_v53 = vld [vmem:[%s1108_s1 + $0xf0] sm:$0xff]  ;;  %v671_v54 = vld [vmem:[%s1108_s1 + $0xf8] sm:$0xff]  ;;  %v672_v56 = vld [vmem:[%s1108_s1 + $0x100] sm:$0xff]  ;;  %s219_s28 = scalar_lea.vmem %s1110_s3, %s1116_s12 }
  0x11   : > { %v220_v17 = vld [vmem:[%s206_s10] sm:$0xff]  ;;  %v221_v18 = vld [vmem:[%s206_s10 + $0x8] sm:$0xff]  ;;  %813 = vmatprep.subr.bf16.mxu1 %v812_v24  ;;  %v864_v55 = vpack.c.bf16 %v671_v54, %v670_v53  ;;  %v674_v59 = vld [vmem:[%s1108_s1 + $0x110] sm:$0xff] }
  0x12   : > { %223 = vst.msk [vmem:[#allocation2 + $0x1] sm:$0xff] %vm222_vm1, %v220_v17  ;;  %224 = vst.msk [vmem:[#allocation2 + $0x9] sm:$0xff] %vm222_vm1, %v221_v18  ;;  %839 = vmatpush3.bf16.msra.mxu0 %v836_v11  ;;  %v673_v57 = vld [vmem:[%s1108_s1 + $0x108] sm:$0xff]  ;;  %v675_v60 = vld [vmem:[%s1108_s1 + $0x118] sm:$0xff] }
  0x13   : > { %841 = vmatprep.subr.bf16.mxu0 %v840_v22  ;;  %v868_v58 = vpack.c.bf16 %v673_v57, %v672_v56  ;;  %v872_v61 = vpack.c.bf16 %v675_v60, %v674_v59 }
  0x14   : > { %815 = vmatpush3.bf16.msra.mxu1 %v812_v24 }
  0x15   : > { %817 = vmatprep.subr.bf16.mxu1 %v816_v31 }
  0x16   : > { %843 = vmatpush3.bf16.msra.mxu0 %v840_v22 }
  0x17   : > { %845 = vmatprep.subr.bf16.mxu0 %v844_v28 }
  0x18   : > { %819 = vmatpush3.bf16.msra.mxu1 %v816_v31 }
  0x19   : > { %v228_v33 = vld [vmem:[#allocation2] sm:$0xff]  ;;  %821 = vmatprep.subr.bf16.mxu1 %v820_v38  ;;  %v229_v46 = vld [vmem:[#allocation2 + $0x8] sm:$0xff] }
  0x1a   : > { %v242_v35 = vld [vmem:[#allocation2 + $0x1] sm:$0xff]  ;;  %774 = vmatprep.mubr.msk.f32.mxu0 %vm222_vm1, %v228_v33  ;;  %847 = vmatpush3.bf16.msra.mxu0 %v844_v28  ;;  %v243_v51 = vld [vmem:[#allocation2 + $0x9] sm:$0xff] }
  0x1b   : > { %747 = vmatprep.mubr.msk.f32.mxu1 %vm222_vm1, %v242_v35  ;;  %849 = vmatprep.subr.bf16.mxu0 %v848_v36  ;;  %v419_v50 = vld [vmem:[#allocation2 + $0x2] sm:$0xff]  ;;  %v420_v62 = vld [vmem:[#allocation2 + $0xa] sm:$0xff] }
  0x1c   : > { %823 = vmatpush3.bf16.msra.mxu1 %v820_v38 }
  0x1d   : > { %825 = vmatprep.subr.bf16.mxu1 %v824_v43 }
  0x1e   : > { %851 = vmatpush3.bf16.msra.mxu0 %v848_v36 }
  0x1f   : > { %853 = vmatprep.subr.bf16.mxu0 %v852_v42 }
  0x20   : > { %827 = vmatpush3.bf16.msra.mxu1 %v824_v43 }
  0x21   : > { %775 = vmatmul.mubr.msk.f32.vlgmr.msra.gmra.mrb[0].mxu0 %vm222_vm1, %v229_v46 }
  0x22   : > { %855 = vmatpush3.bf16.msra.mxu0 %v852_v42  ;;  %801 = vmatprep.mubr.msk.f32.mxu0 %vm222_vm1, %v419_v50 }
  0x23   : > { %857 = vmatprep.subr.bf16.mxu0 %v856_v47  ;;  %748 = vmatmul.mubr.msk.f32.vlgmr.msra.gmra.mrb[0].mxu1 %vm222_vm1, %v243_v51 }
  0x26   : > { %859 = vmatpush3.bf16.msra.mxu0 %v856_v47 }
  0x27   : > { %861 = vmatprep.subr.bf16.mxu0 %v860_v52 }
  0x2a   : > { %863 = vmatpush3.bf16.msra.mxu0 %v860_v52 }
  0x2b   : > { %865 = vmatprep.subr.bf16.mxu0 %v864_v55 }
  0x2e   : > { %867 = vmatpush3.bf16.msra.mxu0 %v864_v55 }
  0x2f   : > { %869 = vmatprep.subr.bf16.mxu0 %v868_v58 }
  0x32   : > { %871 = vmatpush3.bf16.msra.mxu0 %v868_v58 }
  0x33   : > { %873 = vmatprep.subr.bf16.mxu0 %v872_v61 }
  0x36   : > { %875 = vmatpush3.bf16.msra.mxu0 %v872_v61 }
  0x39   : > { %802 = vmatmul.mubr.msk.f32.vlgmr.msra.gmra.mrb[0].mxu0 %vm222_vm1, %v420_v62 }
  0xf6   : > { %v749_v63 = vpop.f32.mrb[0].mxu1 }
  0xf7   : > { %v329_v0 = vpop.f32.mrb[1].mxu1 }
 0x10c   : > { %v803_v1 = vpop.f32.mrb[0].mxu0 }
 0x10d   : > { %v876_v2 = vadd.f32 %v803_v1, %v749_v63  ;;  %v506_v3 = vpop.f32.mrb[1].mxu0 }
 0x10e   : > { %v877_v4 = vadd.f32 %v506_v3, %v329_v0 }
 0x10f   : > { %v526_v5 = vmul.f32 %v876_v2, %v876_v2 }
 0x110   : > { %v517_v6 = vadd.f32 %v877_v4, %v876_v2  ;;  %v525_v7 = vmul.f32 %v877_v4, %v877_v4 }
 0x112   : > { %v518_v8 = vrot.slane %v517_v6, 4  ;;  %v527_v9 = vadd.f32 %v526_v5, %v525_v7 }
 0x114   : > { %v519_v10 = vadd.f32 %v518_v8, %v517_v6  ;;  %v528_v11 = vrot.slane %v527_v9, 4 }
 0x116   : > { %v520_v12 = vrot.slane %v519_v10, 2  ;;  %v529_v13 = vadd.f32 %v528_v11, %v527_v9 }
 0x118   : > { %v521_v14 = vadd.f32 %v520_v12, %v519_v10  ;;  %v530_v15 = vrot.slane %v529_v13, 2 }
 0x11a   : > { %v522_v16 = vrot.slane %v521_v14, 1  ;;  %v531_v17 = vadd.f32 %v530_v15, %v529_v13 }
 0x11c   : > { %v523_v18 = vadd.f32 %v522_v16, %v521_v14  ;;  %v532_v19 = vrot.slane %v531_v17, 1 }
 0x11e   : > { %524 = vst [vmem:[%s213_s25] sm:$0x1] %v523_v18  ;;  %v533_v20 = vadd.f32 %v532_v19, %v531_v17 }
 0x120   : > { %534 = vst [vmem:[%s219_s28] sm:$0x1] %v533_v20 }
 0x121 PF: > { %s14_s14 = sadd.s32 1, %s927_s14   ;;  %s1111_s12 = smov %s923_s13 }
 0x122   : > { %p11_p5 = scmp.ge.s32.totalorder %s14_s14, 4   ;;  %s1112_s13 = smov %s1114_s15 }
 0x124   :  { %13 = sbr.rel (!%p11_p5) target bundleno = 2 (0x2), region = 72 }

// kernel: tile.33
= control target key start
LH: loop header
LB: loop body
LE: loop exit
PB: predicated region body
PF: predicated region fallthrough
CT: control target
= control target key end

     0   :  { %s28_s0 = inlined_call_operand.vmem [shape: f32[8], index: 0, kind: input, shape index: {}]   ;;  %s29_s1 = inlined_call_operand.vmem [shape: f32[16,8], index: 1, kind: output, shape index: {}]  }
   0x1   :  { %v4_v0 = vld [vmem:[%s28_s0] ss:$0 sm:$0xff] }
   0x2   :  { %5 = vst [vmem:[%s29_s1] sm:$0xff] %v4_v0  ;;  %8 = vst [vmem:[%s29_s1 + $0x8] sm:$0xff] %v4_v0 }

// kernel: tile.34
= control target key start
LH: loop header
LB: loop body
LE: loop exit
PB: predicated region body
PF: predicated region fallthrough
CT: control target
= control target key end

     0   :  { %s131_s10 = smov 120   ;;  %s132_s11 = smov 104   ;;  %vm3_vm0 = vcmask 64512   ;;  %vm9_vm1 = vcmask 1048512   ;;  %vm15_vm2 = vcmask 982912   ;;  %vm21_vm3 = vcmask 917312   ;;  %s207_s0 = inlined_call_operand.vmem [shape: f32[16,8], index: 0, kind: input, shape index: {}]   ;;  %s208_s1 = inlined_call_operand.vmem [shape: f32[1,128], index: 1, kind: output, shape index: {}]  }
   0x1   :  { %v101_v0 = vld [vmem:[%s207_s0 + $0xf] sm:$0x1]   ;;  %v103_v1 = vld [vmem:[%s207_s0 + $0xd] sm:$0x1]   ;;  %v102_v2 = vld [vmem:[%s207_s0 + $0xe] sm:$0x1]  }
   0x2   :  { %7 = vrot.lane.b32.xlu0 %v101_v0, %s131_s10  ;;  %19 = vrot.lane.b32.xlu1 %v103_v1, %s132_s11  ;;  %v104_v3 = vld [vmem:[%s207_s0 + $0xc] sm:$0x1]   ;;  %s133_s16 = smov 112   ;;  %s134_s17 = smov 96   ;;  %v105_v4 = vld [vmem:[%s207_s0 + $0xb] sm:$0x1]  }
   0x3   :  { %v106_v5 = vld [vmem:[%s207_s0 + $0xa] sm:$0x1]   ;;  %v2_v6 = vld [vmem:[%s207_s0] sm:$0x1]   ;;  %s135_s24 = smov 88   ;;  %s136_s25 = smov 80  }
   0x4   :  { %4 = vst.msk [vmem:[#allocation0] sm:$0x1] %vm3_vm0, %v2_v6   ;;  %v107_v7 = vld [vmem:[%s207_s0 + $0x9] sm:$0x1]   ;;  %v108_v8 = vld [vmem:[%s207_s0 + $0x8] sm:$0x1]  }
   0x5   :  { %s137_s30 = smov 72   ;;  %s138_s2 = smov 64   ;;  %v109_v9 = vld [vmem:[%s207_s0 + $0x7] sm:$0x1]   ;;  %v110_v10 = vld [vmem:[%s207_s0 + $0x6] sm:$0x1]  }
   0x6   :  { %13 = vrot.lane.b32.xlu0 %v102_v2, %s133_s16  ;;  %25 = vrot.lane.b32.xlu1 %v104_v3, %s134_s17  ;;  %s139_s7 = smov 56   ;;  %s140_s8 = smov 48   ;;  %v111_v11 = vld [vmem:[%s207_s0 + $0x5] sm:$0x1]   ;;  %v112_v12 = vld [vmem:[%s207_s0 + $0x4] sm:$0x1]  }
   0x7   :  { %s141_s13 = smov 40   ;;  %s142_s14 = smov 32   ;;  %v113_v13 = vld [vmem:[%s207_s0 + $0x3] sm:$0x1]   ;;  %v114_v14 = vld [vmem:[%s207_s0 + $0x2] sm:$0x1]  }
   0x8   :  { %s143_s19 = smov 24   ;;  %s144_s20 = smov 16   ;;  %v115_v15 = vld [vmem:[%s207_s0 + $0x1] sm:$0x1]   ;;  %vm27_vm4 = vcmask 851712   ;;  %vm33_vm5 = vcmask 786112  }
   0x9   :  { %s145_s0 = smov 8   ;;  %vm39_vm6 = vcmask 720512   ;;  %vm45_vm7 = vcmask 654912   ;;  %vm51_vm8 = vcmask 589312   ;;  %vm57_vm9 = vcmask 523712  }
   0xa   :  { %31 = vrot.lane.b32.xlu0 %v105_v4, %s135_s24  ;;  %37 = vrot.lane.b32.xlu1 %v106_v5, %s136_s25  ;;  %vm63_vm10 = vcmask 458112   ;;  %vm69_vm11 = vcmask 392512   ;;  %vm75_vm12 = vcmask 326912   ;;  %vm81_vm13 = vcmask 261312  }
   0xb   :  { %vm87_vm14 = vcmask 195712   ;;  %vm93_vm15 = vcmask 130112  }
   0xe   :  { %43 = vrot.lane.b32.xlu0 %v107_v7, %s137_s30  ;;  %49 = vrot.lane.b32.xlu1 %v108_v8, %s138_s2 }
  0x12   :  { %55 = vrot.lane.b32.xlu0 %v109_v9, %s139_s7  ;;  %61 = vrot.lane.b32.xlu1 %v110_v10, %s140_s8 }
  0x16   :  { %67 = vrot.lane.b32.xlu0 %v111_v11, %s141_s13  ;;  %73 = vrot.lane.b32.xlu1 %v112_v12, %s142_s14 }
  0x1a   :  { %79 = vrot.lane.b32.xlu0 %v113_v13, %s143_s19  ;;  %85 = vrot.lane.b32.xlu1 %v114_v14, %s144_s20 }
  0x1e   :  { %91 = vrot.lane.b32.xlu0 %v115_v15, %s145_s0 }
  0x74   :  { %v8_v16 = vpop.permute.xlu0 %7   ;;  %v20_v17 = vpop.permute.xlu1 %19  }
  0x75   :  { %10 = vst.msk [vmem:[#allocation0] sm:$0x1] %vm9_vm1, %v8_v16  }
  0x78   :  { %v14_v18 = vpop.permute.xlu0 %13   ;;  %v26_v19 = vpop.permute.xlu1 %25  }
  0x79   :  { %16 = vst.msk [vmem:[#allocation0] sm:$0x1] %vm15_vm2, %v14_v18  }
  0x7a   :  { %22 = vst.msk [vmem:[#allocation0] sm:$0x1] %vm21_vm3, %v20_v17  }
  0x7b   :  { %28 = vst.msk [vmem:[#allocation0] sm:$0x1] %vm27_vm4, %v26_v19  }
  0x7c   :  { %v32_v20 = vpop.permute.xlu0 %31   ;;  %v38_v21 = vpop.permute.xlu1 %37  }
  0x7d   :  { %34 = vst.msk [vmem:[#allocation0] sm:$0x1] %vm33_vm5, %v32_v20  }
  0x7e   :  { %40 = vst.msk [vmem:[#allocation0] sm:$0x1] %vm39_vm6, %v38_v21  }
  0x80   :  { %v44_v22 = vpop.permute.xlu0 %43   ;;  %v50_v23 = vpop.permute.xlu1 %49  }
  0x81   :  { %46 = vst.msk [vmem:[#allocation0] sm:$0x1] %vm45_vm7, %v44_v22  }
  0x82   :  { %52 = vst.msk [vmem:[#allocation0] sm:$0x1] %vm51_vm8, %v50_v23  }
  0x84   :  { %v56_v24 = vpop.permute.xlu0 %55   ;;  %v62_v25 = vpop.permute.xlu1 %61  }
  0x85   :  { %58 = vst.msk [vmem:[#allocation0] sm:$0x1] %vm57_vm9, %v56_v24  }
  0x86   :  { %64 = vst.msk [vmem:[#allocation0] sm:$0x1] %vm63_vm10, %v62_v25  }
  0x88   :  { %v68_v26 = vpop.permute.xlu0 %67   ;;  %v74_v27 = vpop.permute.xlu1 %73  }
  0x89   :  { %70 = vst.msk [vmem:[#allocation0] sm:$0x1] %vm69_vm11, %v68_v26  }
  0x8a   :  { %76 = vst.msk [vmem:[#allocation0] sm:$0x1] %vm75_vm12, %v74_v27  }
  0x8c   :  { %v80_v28 = vpop.permute.xlu0 %79   ;;  %v86_v29 = vpop.permute.xlu1 %85  }
  0x8d   :  { %82 = vst.msk [vmem:[#allocation0] sm:$0x1] %vm81_vm13, %v80_v28  }
  0x8e   :  { %88 = vst.msk [vmem:[#allocation0] sm:$0x1] %vm87_vm14, %v86_v29  }
  0x90   :  { %v92_v30 = vpop.permute.xlu0 %91  }
  0x91   :  { %94 = vst.msk [vmem:[#allocation0] sm:$0x1] %vm93_vm15, %v92_v30  }
  0x98   :  { %v98_v31 = vld [vmem:[#allocation0] sm:$0x1] }
  0x99   :  { %100 = vst [vmem:[%s208_s1] sm:$0x1] %v98_v31 }

// kernel: stack_decoder_forward.7
= control target key start
LH: loop header
LB: loop body
LE: loop exit
PB: predicated region body
PF: predicated region fallthrough
CT: control target
= control target key end

     0   :  { %s962_s15 = smov 0   ;;  %s964_s16 = smov 0   ;;  %s1124_s0 = inlined_call_operand.vmem [shape: f32[2,16,96], index: 0, kind: input, shape index: {}]   ;;  %s1125_s1 = inlined_call_operand.vmem [shape: f32[3,96,128], index: 1, kind: input, shape index: {}]   ;;  %s1126_s2 = inlined_call_operand.vmem [shape: f32[1,128], index: 2, kind: input, shape index: {}]   ;;  %s1127_s3 = inlined_call_operand.vmem [shape: f32[1,128], index: 3, kind: input, shape index: {}]   ;;  %s1128_s4 = inlined_call_operand.vmem [shape: f32[2,16,128], index: 4, kind: output, shape index: {}]  }
   0x1   :  { %s966_s17 = smov 0  }
   0x2 LB: > { %s26_s18 = sadd.s32 1, %s930_s16  ;;  %p647_p0 = scmp.ge.s32.totalorder %s934_s17, 1  ;;  %s934_s17 = sphi %s966_s17, %s14_s17   ;;  %s930_s16 = sphi %s964_s16, %s1130_s16   ;;  %s926_s15 = sphi %s962_s15, %s1129_s15  }
   0x3   : > { %p28_p1 = scmp.ge.s32.totalorder %s26_s18, 2  ;;  %p183_p2 = scmp.lt.s32.totalorder %s934_s17, 3 }
   0x5   : > { %s1132_s18 = smov (%p28_p1, %s26_s18), 0  ;;  %p184_p3 = pnand %p647_p0, %p183_p2 }
   0x6   : > { %v247_v0 = vld [vmem:[%s1125_s1] sm:$0xff] (!%p184_p3)  ;;  %v248_v1 = vld [vmem:[%s1125_s1 + $0x8] sm:$0xff] (!%p184_p3)  ;;  %v249_v2 = vld [vmem:[%s1125_s1 + $0x10] sm:$0xff] (!%p184_p3)  ;;  %p218_p4 = scmp.lt.s32.totalorder (!%p184_p3), %s926_s15, 1  ;;  %vm242_vm0 = vcmask (!%p184_p3), 778240   ;;  %v936_v8 = vmov (!%p184_p3), 0.0  }
   0x7   : > { %187 = sbr.rel (%p184_p3) target bundleno = 279 (0x117), region = 36  ;;  %v835_v3 = vpack.c.bf16 (!%p184_p3), %v248_v1, %v247_v0  ;;  %v250_v4 = vld [vmem:[%s1125_s1 + $0x18] sm:$0xff] (!%p184_p3)  ;;  %v251_v6 = vld [vmem:[%s1125_s1 + $0x20] sm:$0xff] (!%p184_p3)  ;;  %v252_v7 = vld [vmem:[%s1125_s1 + $0x28] sm:$0xff] (!%p184_p3)  ;;  %243 = vst.msk [vmem:[#allocation2] sm:$0x1] (!%p184_p3), %vm242_vm0, %v936_v8 }
   0x8   : > { %v839_v5 = vpack.c.bf16 (!%p184_p3), %v250_v4, %v249_v2  ;;  %244 = vst.msk [vmem:[#allocation2 + $0x11] sm:$0x1] (!%p184_p3), %vm242_vm0, %v936_v8  ;;  %v652_v9 = vld [vmem:[%s1125_s1 + $0x60] sm:$0xff] (!%p184_p3)  ;;  %v653_v10 = vld [vmem:[%s1125_s1 + $0x68] sm:$0xff] (!%p184_p3)  ;;  %vm239_vm1 = vcmask (!%p184_p3), 785408   ;;  %v843_v11 = vpack.c.bf16 (!%p184_p3), %v252_v7, %v251_v6  ;;  %v253_v12 = vld [vmem:[%s1125_s1 + $0x30] sm:$0xff] (!%p184_p3) }
   0x9   : > { %836 = vmatprep.subr.bf16.mxu0 (!%p184_p3), %v835_v3  ;;  %v811_v13 = vpack.c.bf16 (!%p184_p3), %v653_v10, %v652_v9  ;;  %v654_v14 = vld [vmem:[%s1125_s1 + $0x70] sm:$0xff] (!%p184_p3)  ;;  %v655_v15 = vld [vmem:[%s1125_s1 + $0x78] sm:$0xff] (!%p184_p3)  ;;  %v656_v20 = vld [vmem:[%s1125_s1 + $0x80] sm:$0xff] (!%p184_p3) }
   0xa   : > { %838 = vmatpush3.bf16.msra.mxu0 (!%p184_p3), %v835_v3  ;;  %v254_v16 = vld [vmem:[%s1125_s1 + $0x38] sm:$0xff] (!%p184_p3)  ;;  %v815_v19 = vpack.c.bf16 (!%p184_p3), %v655_v15, %v654_v14  ;;  %v657_v21 = vld [vmem:[%s1125_s1 + $0x88] sm:$0xff] (!%p184_p3)  ;;  %v255_v23 = vld [vmem:[%s1125_s1 + $0x40] sm:$0xff] (!%p184_p3) }
   0xb   : > { %840 = vmatprep.subr.bf16.mxu0 (!%p184_p3), %v839_v5  ;;  %812 = vmatprep.subr.bf16.mxu1 (!%p184_p3), %v811_v13  ;;  %v847_v22 = vpack.c.bf16 (!%p184_p3), %v254_v16, %v253_v12  ;;  %v819_v24 = vpack.c.bf16 (!%p184_p3), %v657_v21, %v656_v20  ;;  %v256_v25 = vld [vmem:[%s1125_s1 + $0x48] sm:$0xff] (!%p184_p3)  ;;  %v658_v26 = vld [vmem:[%s1125_s1 + $0x90] sm:$0xff] (!%p184_p3)  ;;  %v659_v27 = vld [vmem:[%s1125_s1 + $0x98] sm:$0xff] (!%p184_p3) }
   0xc   : > { %814 = vmatpush3.bf16.msra.mxu1 (!%p184_p3), %v811_v13  ;;  %v851_v28 = vpack.c.bf16 (!%p184_p3), %v256_v25, %v255_v23  ;;  %v257_v29 = vld [vmem:[%s1125_s1 + $0x50] sm:$0xff] (!%p184_p3)  ;;  %v258_v30 = vld [vmem:[%s1125_s1 + $0x58] sm:$0xff] (!%p184_p3)  ;;  %v823_v31 = vpack.c.bf16 (!%p184_p3), %v659_v27, %v658_v26  ;;  %v660_v32 = vld [vmem:[%s1125_s1 + $0xa0] sm:$0xff] (!%p184_p3) }
   0xd   : > { %816 = vmatprep.subr.bf16.mxu1 (!%p184_p3), %v815_v19  ;;  %v661_v34 = vld [vmem:[%s1125_s1 + $0xa8] sm:$0xff] (!%p184_p3)  ;;  %v855_v36 = vpack.c.bf16 (!%p184_p3), %v258_v30, %v257_v29  ;;  %v668_v37 = vld [vmem:[%s1125_s1 + $0xc0] sm:$0xff] (!%p184_p3)  ;;  %v662_v40 = vld [vmem:[%s1125_s1 + $0xb0] sm:$0xff] (!%p184_p3) }
   0xe   : > { %s1134_s15 = smov (!%p218_p4, %s926_s15), 1  ;;  %842 = vmatpush3.bf16.msra.mxu0 %v839_v5  ;;  %v827_v38 = vpack.c.bf16 %v661_v34, %v660_v32  ;;  %v669_v39 = vld [vmem:[%s1125_s1 + $0xc8] sm:$0xff]  ;;  %v663_v41 = vld [vmem:[%s1125_s1 + $0xb8] sm:$0xff]  ;;  %v670_v44 = vld [vmem:[%s1125_s1 + $0xd0] sm:$0xff] }
   0xf   : > { %s686_s9 = sshll.u32 %s1134_s15, 4  ;;  %844 = vmatprep.subr.bf16.mxu0 %v843_v11  ;;  %v859_v42 = vpack.c.bf16 %v669_v39, %v668_v37  ;;  %v831_v43 = vpack.c.bf16 %v663_v41, %v662_v40  ;;  %v671_v45 = vld [vmem:[%s1125_s1 + $0xd8] sm:$0xff]  ;;  %v672_v48 = vld [vmem:[%s1125_s1 + $0xe0] sm:$0xff]  ;;  %v673_v49 = vld [vmem:[%s1125_s1 + $0xe8] sm:$0xff] }
  0x10   : > { %s225_s14 = scalar_lea.vmem %s1124_s0, %s686_s9  ;;  %818 = vmatpush3.bf16.msra.mxu1 %v815_v19  ;;  %v863_v47 = vpack.c.bf16 %v671_v45, %v670_v44  ;;  %v867_v52 = vpack.c.bf16 %v673_v49, %v672_v48  ;;  %v674_v53 = vld [vmem:[%s1125_s1 + $0xf0] sm:$0xff]  ;;  %v675_v54 = vld [vmem:[%s1125_s1 + $0xf8] sm:$0xff]  ;;  %v676_v56 = vld [vmem:[%s1125_s1 + $0x100] sm:$0xff]  ;;  %s235_s12 = scalar_lea.vmem %s1128_s4, %s686_s9 }
  0x11   : > { %v237_v17 = vld [vmem:[%s225_s14] sm:$0xff]  ;;  %v238_v18 = vld [vmem:[%s225_s14 + $0x8] sm:$0xff]  ;;  %820 = vmatprep.subr.bf16.mxu1 %v819_v24  ;;  %v871_v55 = vpack.c.bf16 %v675_v54, %v674_v53  ;;  %v678_v59 = vld [vmem:[%s1125_s1 + $0x110] sm:$0xff] }
  0x12   : > { %240 = vst.msk [vmem:[#allocation2 + $0x1] sm:$0xff] %vm239_vm1, %v237_v17  ;;  %241 = vst.msk [vmem:[#allocation2 + $0x9] sm:$0xff] %vm239_vm1, %v238_v18  ;;  %846 = vmatpush3.bf16.msra.mxu0 %v843_v11  ;;  %v677_v57 = vld [vmem:[%s1125_s1 + $0x108] sm:$0xff]  ;;  %v679_v60 = vld [vmem:[%s1125_s1 + $0x118] sm:$0xff] }
  0x13   : > { %848 = vmatprep.subr.bf16.mxu0 %v847_v22  ;;  %v875_v58 = vpack.c.bf16 %v677_v57, %v676_v56  ;;  %v879_v61 = vpack.c.bf16 %v679_v60, %v678_v59  ;;  %v682_v2 = vld [vmem:[%s1126_s2] ss:$0 sm:$0xff] }
  0x14   : > { %822 = vmatpush3.bf16.msra.mxu1 %v819_v24  ;;  %v683_v5 = vld [vmem:[%s1127_s3] ss:$0 sm:$0xff] }
  0x15   : > { %824 = vmatprep.subr.bf16.mxu1 %v823_v31 }
  0x16   : > { %850 = vmatpush3.bf16.msra.mxu0 %v847_v22 }
  0x17   : > { %852 = vmatprep.subr.bf16.mxu0 %v851_v28 }
  0x18   : > { %826 = vmatpush3.bf16.msra.mxu1 %v823_v31 }
  0x19   : > { %v245_v33 = vld [vmem:[#allocation2] sm:$0xff]  ;;  %828 = vmatprep.subr.bf16.mxu1 %v827_v38  ;;  %v246_v46 = vld [vmem:[#allocation2 + $0x8] sm:$0xff] }
  0x1a   : > { %v259_v35 = vld [vmem:[#allocation2 + $0x1] sm:$0xff]  ;;  %781 = vmatprep.mubr.msk.f32.mxu0 %vm239_vm1, %v245_v33  ;;  %854 = vmatpush3.bf16.msra.mxu0 %v851_v28  ;;  %v260_v51 = vld [vmem:[#allocation2 + $0x9] sm:$0xff] }
  0x1b   : > { %754 = vmatprep.mubr.msk.f32.mxu1 %vm239_vm1, %v259_v35  ;;  %856 = vmatprep.subr.bf16.mxu0 %v855_v36  ;;  %v436_v50 = vld [vmem:[#allocation2 + $0x2] sm:$0xff]  ;;  %v437_v62 = vld [vmem:[#allocation2 + $0xa] sm:$0xff] }
  0x1c   : > { %830 = vmatpush3.bf16.msra.mxu1 %v827_v38 }
  0x1d   : > { %832 = vmatprep.subr.bf16.mxu1 %v831_v43 }
  0x1e   : > { %858 = vmatpush3.bf16.msra.mxu0 %v855_v36 }
  0x1f   : > { %860 = vmatprep.subr.bf16.mxu0 %v859_v42 }
  0x20   : > { %834 = vmatpush3.bf16.msra.mxu1 %v831_v43 }
  0x21   : > { %782 = vmatmul.mubr.msk.f32.vlgmr.msra.gmra.mrb[0].mxu0 %vm239_vm1, %v246_v46 }
  0x22   : > { %862 = vmatpush3.bf16.msra.mxu0 %v859_v42  ;;  %808 = vmatprep.mubr.msk.f32.mxu0 %vm239_vm1, %v436_v50 }
  0x23   : > { %864 = vmatprep.subr.bf16.mxu0 %v863_v47  ;;  %755 = vmatmul.mubr.msk.f32.vlgmr.msra.gmra.mrb[0].mxu1 %vm239_vm1, %v260_v51 }
  0x26   : > { %866 = vmatpush3.bf16.msra.mxu0 %v863_v47 }
  0x27   : > { %868 = vmatprep.subr.bf16.mxu0 %v867_v52 }
  0x2a   : > { %870 = vmatpush3.bf16.msra.mxu0 %v867_v52 }
  0x2b   : > { %872 = vmatprep.subr.bf16.mxu0 %v871_v55 }
  0x2e   : > { %874 = vmatpush3.bf16.msra.mxu0 %v871_v55 }
  0x2f   : > { %876 = vmatprep.subr.bf16.mxu0 %v875_v58 }
  0x32   : > { %878 = vmatpush3.bf16.msra.mxu0 %v875_v58 }
  0x33   : > { %880 = vmatprep.subr.bf16.mxu0 %v879_v61 }
  0x36   : > { %882 = vmatpush3.bf16.msra.mxu0 %v879_v61 }
  0x39   : > { %809 = vmatmul.mubr.msk.f32.vlgmr.msra.gmra.mrb[0].mxu0 %vm239_vm1, %v437_v62 }
  0xf6   : > { %v756_v63 = vpop.f32.mrb[0].mxu1 }
  0xf7   : > { %v346_v0 = vpop.f32.mrb[1].mxu1 }
 0x10c   : > { %v810_v1 = vpop.f32.mrb[0].mxu0 }
 0x10d   : > { %v883_v3 = vadd.f32 %v810_v1, %v756_v63  ;;  %v523_v4 = vpop.f32.mrb[1].mxu0 }
 0x10e   : > { %v884_v6 = vadd.f32 %v523_v4, %v346_v0 }
 0x10f   : > { %v542_v7 = vmul.f32 %v883_v3, %v682_v2 }
 0x110   : > { %v541_v8 = vmul.f32 %v884_v6, %v682_v2 }
 0x111   : > { %v551_v9 = vadd.f32 %v683_v5, %v542_v7 }
 0x112   : > { %v550_v10 = vadd.f32 %v683_v5, %v541_v8 }
 0x113   : > { %v553_v11 = vmax.f32 %v551_v9, 0.0 }
 0x114   : > { %v552_v12 = vmax.f32 %v550_v10, 0.0 }
 0x115   : > { %555 = vst [vmem:[%s235_s12 + $0x8] sm:$0xff] %v553_v11 }
 0x116   : > { %554 = vst [vmem:[%s235_s12] sm:$0xff] %v552_v12 }
 0x117 PF: > { %s14_s17 = sadd.s32 1, %s934_s17   ;;  %s1129_s15 = smov %s930_s16 }
 0x118   : > { %p11_p5 = scmp.ge.s32.totalorder %s14_s17, 4   ;;  %s1130_s16 = smov %s1132_s18 }
 0x11a   :  { %13 = sbr.rel (!%p11_p5) target bundleno = 2 (0x2), region = 68 }

// kernel: stack_decoder_forward.8
= control target key start
LH: loop header
LB: loop body
LE: loop exit
PB: predicated region body
PF: predicated region fallthrough
CT: control target
= control target key end

     0   :  { %s1004_s12 = smov 0   ;;  %s1006_s13 = smov 0   ;;  %s1193_s0 = inlined_call_operand.vmem [shape: f32[2,16,128], index: 0, kind: input, shape index: {}]   ;;  %s1194_s1 = inlined_call_operand.vmem [shape: f32[3,128,128], index: 1, kind: input, shape index: {}]   ;;  %s1195_s2 = inlined_call_operand.vmem [shape: f32[2,1,1,128], index: 2, kind: output, shape index: {0}]   ;;  %s1196_s3 = inlined_call_operand.vmem [shape: f32[2,1,1,128], index: 3, kind: output, shape index: {1}]  }
   0x1   :  { %s1008_s14 = smov 0  }
   0x2 LB: > { %s26_s15 = sadd.s32 1, %s977_s13  ;;  %p637_p0 = scmp.ge.s32.totalorder %s981_s14, 1  ;;  %s981_s14 = sphi %s1008_s14, %s14_s14   ;;  %s977_s13 = sphi %s1006_s13, %s1198_s13   ;;  %s973_s12 = sphi %s1004_s12, %s1197_s12  }
   0x3   : > { %p28_p1 = scmp.ge.s32.totalorder %s26_s15, 2  ;;  %p163_p2 = scmp.lt.s32.totalorder %s981_s14, 3 }
   0x5   : > { %s1200_s15 = smov (%p28_p1, %s26_s15), 0  ;;  %p164_p3 = pnand %p637_p0, %p163_p2 }
   0x6   : > { %v228_v0 = vld [vmem:[%s1194_s1] sm:$0xff] (!%p164_p3)  ;;  %v229_v1 = vld [vmem:[%s1194_s1 + $0x8] sm:$0xff] (!%p164_p3)  ;;  %v230_v2 = vld [vmem:[%s1194_s1 + $0x10] sm:$0xff] (!%p164_p3)  ;;  %p199_p4 = scmp.lt.s32.totalorder (!%p164_p3), %s973_s12, 1  ;;  %v983_v5 = vmov (!%p164_p3), 0.0  }
   0x7   : > { %167 = sbr.rel (%p164_p3) target bundleno = 305 (0x131), region = 28  ;;  %v866_v3 = vpack.c.bf16 (!%p164_p3), %v229_v1, %v228_v0  ;;  %v231_v4 = vld [vmem:[%s1194_s1 + $0x18] sm:$0xff] (!%p164_p3)  ;;  %224 = vst [vmem:[#allocation2] sm:$0x1] (!%p164_p3), %v983_v5  ;;  %225 = vst [vmem:[#allocation2 + $0x11] sm:$0x1] (!%p164_p3), %v983_v5 }
   0x8   : > { %v870_v6 = vpack.c.bf16 (!%p164_p3), %v231_v4, %v230_v2  ;;  %v232_v7 = vld [vmem:[%s1194_s1 + $0x20] sm:$0xff] (!%p164_p3)  ;;  %v233_v8 = vld [vmem:[%s1194_s1 + $0x28] sm:$0xff] (!%p164_p3)  ;;  %v234_v12 = vld [vmem:[%s1194_s1 + $0x30] sm:$0xff] (!%p164_p3) }
   0x9   : > { %867 = vmatprep.subr.bf16.mxu0 (!%p164_p3), %v866_v3  ;;  %v874_v9 = vpack.c.bf16 (!%p164_p3), %v233_v8, %v232_v7  ;;  %v640_v10 = vld [vmem:[%s1194_s1 + $0x80] sm:$0xff] (!%p164_p3)  ;;  %v641_v11 = vld [vmem:[%s1194_s1 + $0x88] sm:$0xff] (!%p164_p3)  ;;  %v235_v13 = vld [vmem:[%s1194_s1 + $0x38] sm:$0xff] (!%p164_p3) }
   0xa   : > { %869 = vmatpush3.bf16.msra.mxu0 (!%p164_p3), %v866_v3  ;;  %v834_v14 = vpack.c.bf16 (!%p164_p3), %v641_v11, %v640_v10  ;;  %v642_v17 = vld [vmem:[%s1194_s1 + $0x90] sm:$0xff] (!%p164_p3)  ;;  %v643_v18 = vld [vmem:[%s1194_s1 + $0x98] sm:$0xff] (!%p164_p3)  ;;  %v644_v20 = vld [vmem:[%s1194_s1 + $0xa0] sm:$0xff] (!%p164_p3)  ;;  %v878_v21 = vpack.c.bf16 (!%p164_p3), %v235_v13, %v234_v12 }
   0xb   : > { %871 = vmatprep.subr.bf16.mxu0 (!%p164_p3), %v870_v6  ;;  %v838_v19 = vpack.c.bf16 (!%p164_p3), %v643_v18, %v642_v17  ;;  %v645_v22 = vld [vmem:[%s1194_s1 + $0xa8] sm:$0xff] (!%p164_p3)  ;;  %v236_v23 = vld [vmem:[%s1194_s1 + $0x40] sm:$0xff] (!%p164_p3)  ;;  %v646_v26 = vld [vmem:[%s1194_s1 + $0xb0] sm:$0xff] (!%p164_p3) }
   0xc   : > { %835 = vmatprep.subr.bf16.mxu1 (!%p164_p3), %v834_v14  ;;  %v237_v24 = vld [vmem:[%s1194_s1 + $0x48] sm:$0xff] (!%p164_p3)  ;;  %v842_v25 = vpack.c.bf16 (!%p164_p3), %v645_v22, %v644_v20  ;;  %v647_v27 = vld [vmem:[%s1194_s1 + $0xb8] sm:$0xff] (!%p164_p3)  ;;  %v238_v29 = vld [vmem:[%s1194_s1 + $0x50] sm:$0xff] (!%p164_p3) }
   0xd   : > { %837 = vmatpush3.bf16.msra.mxu1 (!%p164_p3), %v834_v14  ;;  %v882_v28 = vpack.c.bf16 (!%p164_p3), %v237_v24, %v236_v23  ;;  %v239_v30 = vld [vmem:[%s1194_s1 + $0x58] sm:$0xff] (!%p164_p3)  ;;  %v846_v32 = vpack.c.bf16 (!%p164_p3), %v647_v27, %v646_v26  ;;  %v648_v33 = vld [vmem:[%s1194_s1 + $0xc0] sm:$0xff] (!%p164_p3)  ;;  %v649_v34 = vld [vmem:[%s1194_s1 + $0xc8] sm:$0xff] (!%p164_p3) }
   0xe   : > { %s1202_s12 = smov (!%p199_p4, %s973_s12), 1  ;;  %873 = vmatpush3.bf16.msra.mxu0 %v870_v6  ;;  %839 = vmatprep.subr.bf16.mxu1 %v838_v19  ;;  %v886_v35 = vpack.c.bf16 %v239_v30, %v238_v29  ;;  %v240_v36 = vld [vmem:[%s1194_s1 + $0x60] sm:$0xff]  ;;  %v241_v37 = vld [vmem:[%s1194_s1 + $0x68] sm:$0xff]  ;;  %v850_v38 = vpack.c.bf16 %v649_v34, %v648_v33  ;;  %v650_v39 = vld [vmem:[%s1194_s1 + $0xd0] sm:$0xff] }
   0xf   : > { %s674_s28 = sshll.u32 %s1202_s12, 4  ;;  %875 = vmatprep.subr.bf16.mxu0 %v874_v9  ;;  %v651_v40 = vld [vmem:[%s1194_s1 + $0xd8] sm:$0xff]  ;;  %v890_v41 = vpack.c.bf16 %v241_v37, %v240_v36  ;;  %v242_v42 = vld [vmem:[%s1194_s1 + $0x70] sm:$0xff]  ;;  %v652_v45 = vld [vmem:[%s1194_s1 + $0xe0] sm:$0xff]  ;;  %s213_s26 = scalar_lea.vmem %s1195_s2, %s1202_s12 }
  0x10   : > { %s206_s8 = scalar_lea.vmem %s1193_s0, %s674_s28  ;;  %v243_v43 = vld [vmem:[%s1194_s1 + $0x78] sm:$0xff]  ;;  %v854_v44 = vpack.c.bf16 %v651_v40, %v650_v39  ;;  %v653_v46 = vld [vmem:[%s1194_s1 + $0xe8] sm:$0xff]  ;;  %v656_v48 = vld [vmem:[%s1194_s1 + $0x100] sm:$0xff]  ;;  %s219_s29 = scalar_lea.vmem %s1196_s3, %s1202_s12 }
  0x11   : > { %v220_v15 = vld [vmem:[%s206_s8] sm:$0xff]  ;;  %v1058_v16 = vld [vmem:[%s206_s8 + $0x8] sm:$0xff]  ;;  %841 = vmatpush3.bf16.msra.mxu1 %v838_v19  ;;  %v894_v47 = vpack.c.bf16 %v243_v43, %v242_v42  ;;  %v858_v50 = vpack.c.bf16 %v653_v46, %v652_v45  ;;  %v654_v51 = vld [vmem:[%s1194_s1 + $0xf0] sm:$0xff] }
  0x12   : > { %222 = vst [vmem:[#allocation2 + $0x1] sm:$0xff] %v220_v15  ;;  %761 = vmatprep.mubr.f32.mxu1 %v220_v15  ;;  %223 = vst [vmem:[#allocation2 + $0x9] sm:$0xff] %v1058_v16  ;;  %877 = vmatpush3.bf16.msra.mxu0 %v874_v9  ;;  %v657_v49 = vld [vmem:[%s1194_s1 + $0x108] sm:$0xff]  ;;  %v655_v52 = vld [vmem:[%s1194_s1 + $0xf8] sm:$0xff] }
  0x13   : > { %879 = vmatprep.subr.bf16.mxu0 %v878_v21  ;;  %843 = vmatprep.subr.bf16.mxu1 %v842_v25  ;;  %v898_v53 = vpack.c.bf16 %v657_v49, %v656_v48  ;;  %v658_v54 = vld [vmem:[%s1194_s1 + $0x110] sm:$0xff]  ;;  %v659_v55 = vld [vmem:[%s1194_s1 + $0x118] sm:$0xff]  ;;  %v862_v56 = vpack.c.bf16 %v655_v52, %v654_v51  ;;  %v660_v60 = vld [vmem:[%s1194_s1 + $0x120] sm:$0xff] }
  0x14   : > { %v902_v58 = vpack.c.bf16 %v659_v55, %v658_v54  ;;  %v661_v61 = vld [vmem:[%s1194_s1 + $0x128] sm:$0xff]  ;;  %v662_v63 = vld [vmem:[%s1194_s1 + $0x130] sm:$0xff]  ;;  %v663_v0 = vld [vmem:[%s1194_s1 + $0x138] sm:$0xff] }
  0x15   : > { %845 = vmatpush3.bf16.msra.mxu1 %v842_v25  ;;  %v906_v62 = vpack.c.bf16 %v661_v61, %v660_v60  ;;  %v910_v1 = vpack.c.bf16 %v663_v0, %v662_v63  ;;  %v664_v2 = vld [vmem:[%s1194_s1 + $0x140] sm:$0xff]  ;;  %v665_v3 = vld [vmem:[%s1194_s1 + $0x148] sm:$0xff]  ;;  %v666_v5 = vld [vmem:[%s1194_s1 + $0x150] sm:$0xff] }
  0x16   : > { %881 = vmatpush3.bf16.msra.mxu0 %v878_v21  ;;  %847 = vmatprep.subr.bf16.mxu1 %v846_v32  ;;  %v914_v4 = vpack.c.bf16 %v665_v3, %v664_v2  ;;  %v667_v6 = vld [vmem:[%s1194_s1 + $0x158] sm:$0xff]  ;;  %v668_v8 = vld [vmem:[%s1194_s1 + $0x160] sm:$0xff]  ;;  %v669_v9 = vld [vmem:[%s1194_s1 + $0x168] sm:$0xff] }
  0x17   : > { %883 = vmatprep.subr.bf16.mxu0 %v882_v28  ;;  %v918_v7 = vpack.c.bf16 %v667_v6, %v666_v5  ;;  %v922_v10 = vpack.c.bf16 %v669_v9, %v668_v8  ;;  %v670_v11 = vld [vmem:[%s1194_s1 + $0x170] sm:$0xff]  ;;  %v671_v12 = vld [vmem:[%s1194_s1 + $0x178] sm:$0xff] }
  0x18   : > { %v926_v13 = vpack.c.bf16 %v671_v12, %v670_v11 }
  0x19   : > { %v226_v31 = vld [vmem:[#allocation2] sm:$0xff]  ;;  %849 = vmatpush3.bf16.msra.mxu1 %v846_v32  ;;  %v227_v57 = vld [vmem:[#allocation2 + $0x8] sm:$0xff] }
  0x1a   : > { %796 = vmatprep.mubr.f32.mxu0 %v226_v31  ;;  %885 = vmatpush3.bf16.msra.mxu0 %v882_v28  ;;  %v413_v59 = vld [vmem:[#allocation2 + $0x2] sm:$0xff]  ;;  %v414_v14 = vld [vmem:[#allocation2 + $0xa] sm:$0xff] }
  0x1b   : > { %887 = vmatprep.subr.bf16.mxu0 %v886_v35  ;;  %851 = vmatprep.subr.bf16.mxu1 %v850_v38 }
  0x1d   : > { %853 = vmatpush3.bf16.msra.mxu1 %v850_v38 }
  0x1e   : > { %889 = vmatpush3.bf16.msra.mxu0 %v886_v35  ;;  %855 = vmatprep.subr.bf16.mxu1 %v854_v44 }
  0x1f   : > { %891 = vmatprep.subr.bf16.mxu0 %v890_v41 }
  0x21   : > { %857 = vmatpush3.bf16.msra.mxu1 %v854_v44 }
  0x22   : > { %893 = vmatpush3.bf16.msra.mxu0 %v890_v41  ;;  %859 = vmatprep.subr.bf16.mxu1 %v858_v50 }
  0x23   : > { %895 = vmatprep.subr.bf16.mxu0 %v894_v47 }
  0x25   : > { %861 = vmatpush3.bf16.msra.mxu1 %v858_v50 }
  0x26   : > { %897 = vmatpush3.bf16.msra.mxu0 %v894_v47  ;;  %863 = vmatprep.subr.bf16.mxu1 %v862_v56 }
  0x27   : > { %899 = vmatprep.subr.bf16.mxu0 %v898_v53 }
  0x29   : > { %797 = vmatmul.mubr.f32.vlgmr.msra.gmra.mrb[0].mxu0 %v227_v57  ;;  %865 = vmatpush3.bf16.msra.mxu1 %v862_v56 }
  0x2a   : > { %901 = vmatpush3.bf16.msra.mxu0 %v898_v53  ;;  %831 = vmatprep.mubr.f32.mxu0 %v413_v59 }
  0x2b   : > { %903 = vmatprep.subr.bf16.mxu0 %v902_v58 }
  0x2c   : > { %762 = vmatmul.mubr.f32.vlgmr.msra.gmra.mrb[0].mxu1 %v1058_v16 }
  0x2e   : > { %905 = vmatpush3.bf16.msra.mxu0 %v902_v58 }
  0x2f   : > { %907 = vmatprep.subr.bf16.mxu0 %v906_v62 }
  0x32   : > { %909 = vmatpush3.bf16.msra.mxu0 %v906_v62 }
  0x33   : > { %911 = vmatprep.subr.bf16.mxu0 %v910_v1 }
  0x36   : > { %913 = vmatpush3.bf16.msra.mxu0 %v910_v1 }
  0x37   : > { %915 = vmatprep.subr.bf16.mxu0 %v914_v4 }
  0x3a   : > { %917 = vmatpush3.bf16.msra.mxu0 %v914_v4 }
  0x3b   : > { %919 = vmatprep.subr.bf16.mxu0 %v918_v7 }
  0x3e   : > { %921 = vmatpush3.bf16.msra.mxu0 %v918_v7 }
  0x3f   : > { %923 = vmatprep.subr.bf16.mxu0 %v922_v10 }
  0x42   : > { %925 = vmatpush3.bf16.msra.mxu0 %v922_v10 }
  0x43   : > { %927 = vmatprep.subr.bf16.mxu0 %v926_v13 }
  0x46   : > { %929 = vmatpush3.bf16.msra.mxu0 %v926_v13 }
  0x49   : > { %832 = vmatmul.mubr.f32.vlgmr.msra.gmra.mrb[0].mxu0 %v414_v14 }
  0xff   : > { %v763_v15 = vpop.f32.mrb[0].mxu1 }
 0x100   : > { %v329_v16 = vpop.f32.mrb[1].mxu1 }
 0x11c   : > { %v833_v17 = vpop.f32.mrb[0].mxu0 }
 0x11d   : > { %v930_v18 = vadd.f32 %v833_v17, %v763_v15  ;;  %v498_v19 = vpop.f32.mrb[1].mxu0 }
 0x11e   : > { %v931_v20 = vadd.f32 %v498_v19, %v329_v16 }
 0x11f   : > { %v518_v21 = vmul.f32 %v930_v18, %v930_v18 }
 0x120   : > { %v509_v22 = vadd.f32 %v931_v20, %v930_v18  ;;  %v517_v23 = vmul.f32 %v931_v20, %v931_v20 }
 0x122   : > { %v510_v24 = vrot.slane %v509_v22, 4  ;;  %v519_v25 = vadd.f32 %v518_v21, %v517_v23 }
 0x124   : > { %v511_v26 = vadd.f32 %v510_v24, %v509_v22  ;;  %v520_v27 = vrot.slane %v519_v25, 4 }
 0x126   : > { %v512_v28 = vrot.slane %v511_v26, 2  ;;  %v521_v29 = vadd.f32 %v520_v27, %v519_v25 }
 0x128   : > { %v513_v30 = vadd.f32 %v512_v28, %v511_v26  ;;  %v522_v31 = vrot.slane %v521_v29, 2 }
 0x12a   : > { %v514_v32 = vrot.slane %v513_v30, 1  ;;  %v523_v33 = vadd.f32 %v522_v31, %v521_v29 }
 0x12c   : > { %v515_v34 = vadd.f32 %v514_v32, %v513_v30  ;;  %v524_v35 = vrot.slane %v523_v33, 1 }
 0x12e   : > { %516 = vst [vmem:[%s213_s26] sm:$0x1] %v515_v34  ;;  %v525_v36 = vadd.f32 %v524_v35, %v523_v33 }
 0x130   : > { %526 = vst [vmem:[%s219_s29] sm:$0x1] %v525_v36 }
 0x131 PF: > { %s14_s14 = sadd.s32 1, %s981_s14   ;;  %s1197_s12 = smov %s977_s13 }
 0x132   : > { %p11_p5 = scmp.ge.s32.totalorder %s14_s14, 4   ;;  %s1198_s13 = smov %s1200_s15 }
 0x134   :  { %13 = sbr.rel (!%p11_p5) target bundleno = 2 (0x2), region = 72 }

// kernel: stack_decoder_forward.9
= control target key start
LH: loop header
LB: loop body
LE: loop exit
PB: predicated region body
PF: predicated region fallthrough
CT: control target
= control target key end

     0   :  { %s1016_s15 = smov 0   ;;  %s1018_s16 = smov 0   ;;  %s1210_s0 = inlined_call_operand.vmem [shape: f32[2,16,128], index: 0, kind: input, shape index: {}]   ;;  %s1211_s1 = inlined_call_operand.vmem [shape: f32[3,128,128], index: 1, kind: input, shape index: {}]   ;;  %s1212_s2 = inlined_call_operand.vmem [shape: f32[1,128], index: 2, kind: input, shape index: {}]   ;;  %s1213_s3 = inlined_call_operand.vmem [shape: f32[1,128], index: 3, kind: input, shape index: {}]   ;;  %s1214_s4 = inlined_call_operand.vmem [shape: f32[2,16,128], index: 4, kind: output, shape index: {}]  }
   0x1   :  { %s1020_s17 = smov 0  }
   0x2 LB: > { %s26_s18 = sadd.s32 1, %s984_s16  ;;  %p639_p0 = scmp.ge.s32.totalorder %s988_s17, 1  ;;  %s988_s17 = sphi %s1020_s17, %s14_s17   ;;  %s984_s16 = sphi %s1018_s16, %s1216_s16   ;;  %s980_s15 = sphi %s1016_s15, %s1215_s15  }
   0x3   : > { %p28_p1 = scmp.ge.s32.totalorder %s26_s18, 2  ;;  %p183_p2 = scmp.lt.s32.totalorder %s988_s17, 3 }
   0x5   : > { %s1218_s18 = smov (%p28_p1, %s26_s18), 0  ;;  %p184_p3 = pnand %p639_p0, %p183_p2 }
   0x6   : > { %v245_v0 = vld [vmem:[%s1211_s1] sm:$0xff] (!%p184_p3)  ;;  %v246_v1 = vld [vmem:[%s1211_s1 + $0x8] sm:$0xff] (!%p184_p3)  ;;  %v247_v2 = vld [vmem:[%s1211_s1 + $0x10] sm:$0xff] (!%p184_p3)  ;;  %p218_p4 = scmp.lt.s32.totalorder (!%p184_p3), %s980_s15, 1  ;;  %v990_v5 = vmov (!%p184_p3), 0.0  }
   0x7   : > { %187 = sbr.rel (%p184_p3) target bundleno = 295 (0x127), region = 36  ;;  %v873_v3 = vpack.c.bf16 (!%p184_p3), %v246_v1, %v245_v0  ;;  %v248_v4 = vld [vmem:[%s1211_s1 + $0x18] sm:$0xff] (!%p184_p3)  ;;  %241 = vst [vmem:[#allocation2] sm:$0x1] (!%p184_p3), %v990_v5  ;;  %242 = vst [vmem:[#allocation2 + $0x11] sm:$0x1] (!%p184_p3), %v990_v5 }
   0x8   : > { %v877_v6 = vpack.c.bf16 (!%p184_p3), %v248_v4, %v247_v2  ;;  %v249_v7 = vld [vmem:[%s1211_s1 + $0x20] sm:$0xff] (!%p184_p3)  ;;  %v250_v8 = vld [vmem:[%s1211_s1 + $0x28] sm:$0xff] (!%p184_p3)  ;;  %v251_v12 = vld [vmem:[%s1211_s1 + $0x30] sm:$0xff] (!%p184_p3) }
   0x9   : > { %874 = vmatprep.subr.bf16.mxu0 (!%p184_p3), %v873_v3  ;;  %v881_v9 = vpack.c.bf16 (!%p184_p3), %v250_v8, %v249_v7  ;;  %v644_v10 = vld [vmem:[%s1211_s1 + $0x80] sm:$0xff] (!%p184_p3)  ;;  %v645_v11 = vld [vmem:[%s1211_s1 + $0x88] sm:$0xff] (!%p184_p3)  ;;  %v252_v13 = vld [vmem:[%s1211_s1 + $0x38] sm:$0xff] (!%p184_p3) }
   0xa   : > { %876 = vmatpush3.bf16.msra.mxu0 (!%p184_p3), %v873_v3  ;;  %v841_v14 = vpack.c.bf16 (!%p184_p3), %v645_v11, %v644_v10  ;;  %v646_v17 = vld [vmem:[%s1211_s1 + $0x90] sm:$0xff] (!%p184_p3)  ;;  %v647_v18 = vld [vmem:[%s1211_s1 + $0x98] sm:$0xff] (!%p184_p3)  ;;  %v648_v20 = vld [vmem:[%s1211_s1 + $0xa0] sm:$0xff] (!%p184_p3)  ;;  %v885_v21 = vpack.c.bf16 (!%p184_p3), %v252_v13, %v251_v12 }
   0xb   : > { %878 = vmatprep.subr.bf16.mxu0 (!%p184_p3), %v877_v6  ;;  %v845_v19 = vpack.c.bf16 (!%p184_p3), %v647_v18, %v646_v17  ;;  %v649_v22 = vld [vmem:[%s1211_s1 + $0xa8] sm:$0xff] (!%p184_p3)  ;;  %v253_v23 = vld [vmem:[%s1211_s1 + $0x40] sm:$0xff] (!%p184_p3)  ;;  %v650_v26 = vld [vmem:[%s1211_s1 + $0xb0] sm:$0xff] (!%p184_p3) }
   0xc   : > { %842 = vmatprep.subr.bf16.mxu1 (!%p184_p3), %v841_v14  ;;  %v254_v24 = vld [vmem:[%s1211_s1 + $0x48] sm:$0xff] (!%p184_p3)  ;;  %v849_v25 = vpack.c.bf16 (!%p184_p3), %v649_v22, %v648_v20  ;;  %v651_v27 = vld [vmem:[%s1211_s1 + $0xb8] sm:$0xff] (!%p184_p3)  ;;  %v255_v29 = vld [vmem:[%s1211_s1 + $0x50] sm:$0xff] (!%p184_p3) }
   0xd   : > { %844 = vmatpush3.bf16.msra.mxu1 (!%p184_p3), %v841_v14  ;;  %v889_v28 = vpack.c.bf16 (!%p184_p3), %v254_v24, %v253_v23  ;;  %v256_v30 = vld [vmem:[%s1211_s1 + $0x58] sm:$0xff] (!%p184_p3)  ;;  %v853_v32 = vpack.c.bf16 (!%p184_p3), %v651_v27, %v650_v26  ;;  %v652_v33 = vld [vmem:[%s1211_s1 + $0xc0] sm:$0xff] (!%p184_p3)  ;;  %v653_v34 = vld [vmem:[%s1211_s1 + $0xc8] sm:$0xff] (!%p184_p3) }
   0xe   : > { %s1220_s15 = smov (!%p218_p4, %s980_s15), 1  ;;  %880 = vmatpush3.bf16.msra.mxu0 %v877_v6  ;;  %846 = vmatprep.subr.bf16.mxu1 %v845_v19  ;;  %v893_v35 = vpack.c.bf16 %v256_v30, %v255_v29  ;;  %v257_v36 = vld [vmem:[%s1211_s1 + $0x60] sm:$0xff]  ;;  %v258_v37 = vld [vmem:[%s1211_s1 + $0x68] sm:$0xff]  ;;  %v857_v38 = vpack.c.bf16 %v653_v34, %v652_v33  ;;  %v654_v39 = vld [vmem:[%s1211_s1 + $0xd0] sm:$0xff] }
   0xf   : > { %s680_s5 = sshll.u32 %s1220_s15, 4  ;;  %882 = vmatprep.subr.bf16.mxu0 %v881_v9  ;;  %v655_v40 = vld [vmem:[%s1211_s1 + $0xd8] sm:$0xff]  ;;  %v897_v41 = vpack.c.bf16 %v258_v37, %v257_v36  ;;  %v259_v42 = vld [vmem:[%s1211_s1 + $0x70] sm:$0xff]  ;;  %v656_v45 = vld [vmem:[%s1211_s1 + $0xe0] sm:$0xff] }
  0x10   : > { %s225_s12 = scalar_lea.vmem %s1210_s0, %s680_s5  ;;  %v260_v43 = vld [vmem:[%s1211_s1 + $0x78] sm:$0xff]  ;;  %v861_v44 = vpack.c.bf16 %v655_v40, %v654_v39  ;;  %v657_v46 = vld [vmem:[%s1211_s1 + $0xe8] sm:$0xff]  ;;  %v660_v48 = vld [vmem:[%s1211_s1 + $0x100] sm:$0xff]  ;;  %s235_s19 = scalar_lea.vmem %s1214_s4, %s680_s5 }
  0x11   : > { %v237_v15 = vld [vmem:[%s225_s12] sm:$0xff]  ;;  %v1072_v16 = vld [vmem:[%s225_s12 + $0x8] sm:$0xff]  ;;  %848 = vmatpush3.bf16.msra.mxu1 %v845_v19  ;;  %v901_v47 = vpack.c.bf16 %v260_v43, %v259_v42  ;;  %v865_v50 = vpack.c.bf16 %v657_v46, %v656_v45  ;;  %v658_v51 = vld [vmem:[%s1211_s1 + $0xf0] sm:$0xff] }
  0x12   : > { %239 = vst [vmem:[#allocation2 + $0x1] sm:$0xff] %v237_v15  ;;  %768 = vmatprep.mubr.f32.mxu1 %v237_v15  ;;  %240 = vst [vmem:[#allocation2 + $0x9] sm:$0xff] %v1072_v16  ;;  %884 = vmatpush3.bf16.msra.mxu0 %v881_v9  ;;  %v661_v49 = vld [vmem:[%s1211_s1 + $0x108] sm:$0xff]  ;;  %v659_v52 = vld [vmem:[%s1211_s1 + $0xf8] sm:$0xff] }
  0x13   : > { %886 = vmatprep.subr.bf16.mxu0 %v885_v21  ;;  %850 = vmatprep.subr.bf16.mxu1 %v849_v25  ;;  %v905_v53 = vpack.c.bf16 %v661_v49, %v660_v48  ;;  %v662_v54 = vld [vmem:[%s1211_s1 + $0x110] sm:$0xff]  ;;  %v663_v55 = vld [vmem:[%s1211_s1 + $0x118] sm:$0xff]  ;;  %v869_v56 = vpack.c.bf16 %v659_v52, %v658_v51  ;;  %v664_v60 = vld [vmem:[%s1211_s1 + $0x120] sm:$0xff] }
  0x14   : > { %v909_v58 = vpack.c.bf16 %v663_v55, %v662_v54  ;;  %v665_v61 = vld [vmem:[%s1211_s1 + $0x128] sm:$0xff]  ;;  %v666_v63 = vld [vmem:[%s1211_s1 + $0x130] sm:$0xff]  ;;  %v667_v0 = vld [vmem:[%s1211_s1 + $0x138] sm:$0xff] }
  0x15   : > { %852 = vmatpush3.bf16.msra.mxu1 %v849_v25  ;;  %v913_v62 = vpack.c.bf16 %v665_v61, %v664_v60  ;;  %v917_v1 = vpack.c.bf16 %v667_v0, %v666_v63  ;;  %v668_v2 = vld [vmem:[%s1211_s1 + $0x140] sm:$0xff]  ;;  %v669_v3 = vld [vmem:[%s1211_s1 + $0x148] sm:$0xff]  ;;  %v670_v5 = vld [vmem:[%s1211_s1 + $0x150] sm:$0xff] }
  0x16   : > { %888 = vmatpush3.bf16.msra.mxu0 %v885_v21  ;;  %854 = vmatprep.subr.bf16.mxu1 %v853_v32  ;;  %v921_v4 = vpack.c.bf16 %v669_v3, %v668_v2  ;;  %v671_v6 = vld [vmem:[%s1211_s1 + $0x158] sm:$0xff]  ;;  %v672_v8 = vld [vmem:[%s1211_s1 + $0x160] sm:$0xff]  ;;  %v673_v9 = vld [vmem:[%s1211_s1 + $0x168] sm:$0xff] }
  0x17   : > { %890 = vmatprep.subr.bf16.mxu0 %v889_v28  ;;  %v925_v7 = vpack.c.bf16 %v671_v6, %v670_v5  ;;  %v929_v10 = vpack.c.bf16 %v673_v9, %v672_v8  ;;  %v674_v11 = vld [vmem:[%s1211_s1 + $0x170] sm:$0xff]  ;;  %v675_v12 = vld [vmem:[%s1211_s1 + $0x178] sm:$0xff]  ;;  %v676_v18 = vld [vmem:[%s1212_s2] ss:$0 sm:$0xff] }
  0x18   : > { %v933_v13 = vpack.c.bf16 %v675_v12, %v674_v11  ;;  %v677_v21 = vld [vmem:[%s1213_s3] ss:$0 sm:$0xff] }
  0x19   : > { %v243_v31 = vld [vmem:[#allocation2] sm:$0xff]  ;;  %856 = vmatpush3.bf16.msra.mxu1 %v853_v32  ;;  %v244_v57 = vld [vmem:[#allocation2 + $0x8] sm:$0xff] }
  0x1a   : > { %803 = vmatprep.mubr.f32.mxu0 %v243_v31  ;;  %892 = vmatpush3.bf16.msra.mxu0 %v889_v28  ;;  %v430_v59 = vld [vmem:[#allocation2 + $0x2] sm:$0xff]  ;;  %v431_v14 = vld [vmem:[#allocation2 + $0xa] sm:$0xff] }
  0x1b   : > { %894 = vmatprep.subr.bf16.mxu0 %v893_v35  ;;  %858 = vmatprep.subr.bf16.mxu1 %v857_v38 }
  0x1d   : > { %860 = vmatpush3.bf16.msra.mxu1 %v857_v38 }
  0x1e   : > { %896 = vmatpush3.bf16.msra.mxu0 %v893_v35  ;;  %862 = vmatprep.subr.bf16.mxu1 %v861_v44 }
  0x1f   : > { %898 = vmatprep.subr.bf16.mxu0 %v897_v41 }
  0x21   : > { %864 = vmatpush3.bf16.msra.mxu1 %v861_v44 }
  0x22   : > { %900 = vmatpush3.bf16.msra.mxu0 %v897_v41  ;;  %866 = vmatprep.subr.bf16.mxu1 %v865_v50 }
  0x23   : > { %902 = vmatprep.subr.bf16.mxu0 %v901_v47 }
  0x25   : > { %868 = vmatpush3.bf16.msra.mxu1 %v865_v50 }
  0x26   : > { %904 = vmatpush3.bf16.msra.mxu0 %v901_v47  ;;  %870 = vmatprep.subr.bf16.mxu1 %v869_v56 }
  0x27   : > { %906 = vmatprep.subr.bf16.mxu0 %v905_v53 }
  0x29   : > { %804 = vmatmul.mubr.f32.vlgmr.msra.gmra.mrb[0].mxu0 %v244_v57  ;;  %872 = vmatpush3.bf16.msra.mxu1 %v869_v56 }
  0x2a   : > { %908 = vmatpush3.bf16.msra.mxu0 %v905_v53  ;;  %838 = vmatprep.mubr.f32.mxu0 %v430_v59 }
  0x2b   : > { %910 = vmatprep.subr.bf16.mxu0 %v909_v58 }
  0x2c   : > { %769 = vmatmul.mubr.f32.vlgmr.msra.gmra.mrb[0].mxu1 %v1072_v16 }
  0x2e   : > { %912 = vmatpush3.bf16.msra.mxu0 %v909_v58 }
  0x2f   : > { %914 = vmatprep.subr.bf16.mxu0 %v913_v62 }
  0x32   : > { %916 = vmatpush3.bf16.msra.mxu0 %v913_v62 }
  0x33   : > { %918 = vmatprep.subr.bf16.mxu0 %v917_v1 }
  0x36   : > { %920 = vmatpush3.bf16.msra.mxu0 %v917_v1 }
  0x37   : > { %922 = vmatprep.subr.bf16.mxu0 %v921_v4 }
  0x3a   : > { %924 = vmatpush3.bf16.msra.mxu0 %v921_v4 }
  0x3b   : > { %926 = vmatprep.subr.bf16.mxu0 %v925_v7 }
  0x3e   : > { %928 = vmatpush3.bf16.msra.mxu0 %v925_v7 }
  0x3f   : > { %930 = vmatprep.subr.bf16.mxu0 %v929_v10 }
  0x42   : > { %932 = vmatpush3.bf16.msra.mxu0 %v929_v10 }
  0x43   : > { %934 = vmatprep.subr.bf16.mxu0 %v933_v13 }
  0x46   : > { %936 = vmatpush3.bf16.msra.mxu0 %v933_v13 }
  0x49   : > { %839 = vmatmul.mubr.f32.vlgmr.msra.gmra.mrb[0].mxu0 %v431_v14 }
  0xff   : > { %v770_v15 = vpop.f32.mrb[0].mxu1 }
 0x100   : > { %v346_v16 = vpop.f32.mrb[1].mxu1 }
 0x11c   : > { %v840_v17 = vpop.f32.mrb[0].mxu0 }
 0x11d   : > { %v937_v19 = vadd.f32 %v840_v17, %v770_v15  ;;  %v515_v20 = vpop.f32.mrb[1].mxu0 }
 0x11e   : > { %v938_v22 = vadd.f32 %v515_v20, %v346_v16 }
 0x11f   : > { %v534_v23 = vmul.f32 %v937_v19, %v676_v18 }
 0x120   : > { %v533_v24 = vmul.f32 %v938_v22, %v676_v18 }
 0x121   : > { %v543_v25 = vadd.f32 %v677_v21, %v534_v23 }
 0x122   : > { %v542_v26 = vadd.f32 %v677_v21, %v533_v24 }
 0x123   : > { %v545_v27 = vmax.f32 %v543_v25, 0.0 }
 0x124   : > { %v544_v28 = vmax.f32 %v542_v26, 0.0 }
 0x125   : > { %547 = vst [vmem:[%s235_s19 + $0x8] sm:$0xff] %v545_v27 }
 0x126   : > { %546 = vst [vmem:[%s235_s19] sm:$0xff] %v544_v28 }
 0x127 PF: > { %s14_s17 = sadd.s32 1, %s988_s17   ;;  %s1215_s15 = smov %s984_s16 }
 0x128   : > { %p11_p5 = scmp.ge.s32.totalorder %s14_s17, 4   ;;  %s1216_s16 = smov %s1218_s18 }
 0x12a   :  { %13 = sbr.rel (!%p11_p5) target bundleno = 2 (0x2), region = 68 }

</bundles_post_ra>
